<compile_context>
chip_gen: v7x
topology: tpu7x:2x2x1
jax: 0.10.0
libtpu: 0.0.40
codegen_flags: <defaults>
</compile_context>

<pallas_src>
import numpy as np
import jax
import jax.numpy as jnp
from jax.experimental import pallas as pl
from jax.experimental.pallas import tpu as pltpu


# ----------------------------- helpers ------------------------------------- #

def _elu(x):
    # PyTorch nn.ELU(alpha=1.0).
    # TODO(synk): expm1 would be slightly more accurate near 0 than exp(x)-1.
    return jnp.where(x > 0, x, jnp.exp(jnp.minimum(x, 0.0)) - 1.0)


def _shift_left(x, d):
    """out[:, q] = x[:, q + d] (lanes wrap at the end; wrapped lanes are never
    read by valid outputs). Static-shift equivalent of jnp.roll(x, -d, axis=1)."""
    if d == 0:
        return x
    return jnp.concatenate([x[:, d:], x[:, :d]], axis=1)


# ----------------------------- fused Pallas kernel -------------------------- #

def _make_up_kernel(NB, Cout, L, Ws, use_norm, n_layers):
    def kernel(*refs):
        x_ref, y_ref, wt_ref, tb_ref, d_ref = refs[:5]
        pos = 5
        if use_norm:
            nw_ref, nb_ref = refs[pos], refs[pos + 1]
            pos += 2
        cw_refs = [refs[pos + 2 * l] for l in range(n_layers)]
        cb_refs = [refs[pos + 2 * l + 1] for l in range(n_layers)]
        o_ref = refs[pos + 2 * n_layers]

        f32 = jnp.float32
        for b in range(NB):                       # images in this grid block
            x_flat = x_ref[b].astype(f32)         # (Cin, Hx*Wx)
            y_slab = y_ref[b].astype(f32)         # (Cy, L)   canvas layout

            # ---- Stage A: ConvTranspose2d(k=2, s=2), scattered onto canvas ----
            # One batched weight matmul over (tap, co), then 4 exact 0/1 scatter
            # matmuls (dilate-by-2 + clip offset baked into D).
            S = jnp.dot(wt_ref[...], x_flat, preferred_element_type=f32)  # (4*Cout, Hx*Wx)
            up = jnp.zeros((Cout, L), f32) + tb_ref[...]                  # bias splat
            for t in range(4):
                up = up + jnp.dot(S[t * Cout:(t + 1) * Cout, :], d_ref[t],
                                  preferred_element_type=f32)

            # ---- Stage B: optional 2x2 normconv + ELU (clip is implicit) ------
            if use_norm:
                acc = jnp.zeros((Cout, L), f32) + nb_ref[...]
                for t, dsh in enumerate((0, 1, Ws, Ws + 1)):
                    acc = acc + jnp.dot(nw_ref[t], _shift_left(y_slab, dsh),
                                        preferred_element_type=f32)
                yb = _elu(acc)
            else:
                yb = y_slab

            # ---- Stage C: concat + (1 + repeats) x (3x3 valid conv + ELU) -----
            chans = jnp.concatenate([up, yb], axis=0)      # (2*Cout, L)
            for layer in range(n_layers):
                acc = jnp.zeros((Cout, L), f32) + cb_refs[layer][...]
                for kh in range(3):
                    for kw in range(3):
                        sl = _shift_left(chans, kh * Ws + kw)
                        acc = acc + jnp.dot(cw_refs[layer][kh * 3 + kw], sl,
                                            preferred_element_type=f32)
                chans = _elu(acc)                          # (Cout, L)

            o_ref[b] = chans.astype(o_ref.dtype)           # lane-dense store

    return kernel


def up_module_forward(params, x, y):
    N, Cin, Hx, Wx = x.shape
    Ny, Cy, Hy, Wy = y.shape
    assert N == Ny
    Cout = int(params["convT_b"].shape[0])
    assert Cy == Cout, "UpModule expects y to carry out_dims channels"
    Hu, Wu = 2 * Hx, 2 * Wx

    # static clip_align bookkeeping (matches deepcoloring.architecture.clip_align)
    # TODO(synk): original clip_align prints (deltax, deltay) on host; omitted.
    use_norm = (Hy % 2 == 1)
    Hy2, Wy2 = (Hy - 1, Wy - 1) if use_norm else (Hy, Wy)
    dh, dw = (Hy2 - Hu) // 2, (Wy2 - Wu) // 2
    if dh > 0 and dw > 0:
        assert Hy2 - 2 * dh == Hu and Wy2 - 2 * dw == Wu, "clip_align size mismatch"
        off_h, off_w = dh, dw
    else:
        assert (Hy2, Wy2) == (Hu, Wu), "clip_align size mismatch"
        off_h, off_w = 0, 0

    n_layers = len(params["conv_ws"])
    Hout, Wout = Hu - 2 * n_layers, Wu - 2 * n_layers

    Ws = Wy                          # canvas row stride (= y's width)
    Lx = Hx * Wx
    L0 = Hy * Wy
    L = ((L0 + 127) // 128) * 128    # lane-dense, 128-aligned canvas length

    # lane-flattened inputs
    x_flat = x.reshape(N, Cin, Lx)
    y_pad = jnp.pad(y.reshape(N, Cy, L0), ((0, 0), (0, 0), (0, L - L0)))

    # weights reshaped for (Cout, cin) @ (cin, L) MXU matmuls
    wt = jnp.transpose(params["convT_w"], (2, 3, 1, 0)).reshape(4 * Cout, Cin)
    tb = params["convT_b"].reshape(Cout, 1)
    nw = jnp.transpose(params["norm_w"], (2, 3, 0, 1)).reshape(4, Cout, Cy)
    nb = params["norm_b"].reshape(Cout, 1)
    cws = [jnp.transpose(w, (2, 3, 0, 1)).reshape(9, Cout, int(w.shape[1]))
           for w in params["conv_ws"]]
    cbs = [b.reshape(Cout, 1) for b in params["conv_bs"]]

    # exact 0/1 subpixel scatter: x(h,w), tap (kh,kw) -> canvas (off_h+2h+kh, off_w+2w+kw)
    D = np.zeros((4, Lx, L), np.float32)
    for kh in range(2):
        for kw in range(2):
            t = kh * 2 + kw
            for h in range(Hx):
                for w in range(Wx):
                    D[t, h * Wx + w, (off_h + 2 * h + kh) * Ws + (off_w + 2 * w + kw)] = 1.0
    D = jnp.asarray(D)

    # Grid: at most 2 steps so both v7x TensorCores get work; on v5e/v6e this
    # folds the batch into >= N/2 images per step (amortized step/DMA overhead).
    n_blocks = 2 if (N >= 2 and N % 2 == 0) else 1
    NB = N // n_blocks

    kernel = _make_up_kernel(NB, Cout, L, Ws, use_norm, n_layers)

    def full_spec(shape):
        nd = len(shape)
        return pl.BlockSpec(shape, lambda n, _nd=nd: (0,) * _nd)

    in_specs = [
        pl.BlockSpec((NB, Cin, Lx), lambda n: (n, 0, 0)),
        pl.BlockSpec((NB, Cy, L), lambda n: (n, 0, 0)),
        full_spec(wt.shape), full_spec(tb.shape), full_spec(D.shape),
    ]
    args = [x_flat, y_pad, wt, tb, D]
    if use_norm:
        in_specs += [full_spec(nw.shape), full_spec(nb.shape)]
        args += [nw, nb]
    for w, b in zip(cws, cbs):
        in_specs += [full_spec(w.shape), full_spec(b.shape)]
        args += [w, b]

    out = pl.pallas_call(
        kernel,
        out_shape=jax.ShapeDtypeStruct((N, Cout, L), x.dtype),
        grid=(n_blocks,),
        in_specs=in_specs,
        out_specs=pl.BlockSpec((NB, Cout, L), lambda n: (n, 0, 0)),
        compiler_params=pltpu.CompilerParams(
            dimension_semantics=("parallel",),
            vmem_limit_bytes=32 * 1024 * 1024,   # explicit guard (v7x has 64 MiB total)
        ),
    )(*args)

    # crop the canvas back to the module output (layout plumbing in the wrapper)
    out = out[:, :, :L0].reshape(N, Cout, Hy, Wy)
    return out[:, :, off_h:off_h + Hout, off_w:off_w + Wout]


# ----------------------------- params -------------------------------------- #

def init_params(key, in_dims, out_dims, repeats=1):
    ks = jax.random.split(key, 6 + 2 * (repeats + 1))
    p = {
        "convT_w": 0.1 * jax.random.normal(ks[0], (in_dims, out_dims, 2, 2), jnp.float32),
        "convT_b": 0.1 * jax.random.normal(ks[1], (out_dims,), jnp.float32),
        "norm_w": 0.1 * jax.random.normal(ks[2], (out_dims, out_dims, 2, 2), jnp.float32),
        "norm_b": 0.1 * jax.random.normal(ks[3], (out_dims,), jnp.float32),
        "conv_ws": [],
        "conv_bs": [],
    }
    cins = [2 * out_dims] + [out_dims] * repeats
    for i, cin in enumerate(cins):
        p["conv_ws"].append(0.1 * jax.random.normal(ks[4 + 2 * i], (out_dims, cin, 3, 3), jnp.float32))
        p["conv_bs"].append(0.1 * jax.random.normal(ks[5 + 2 * i], (out_dims,), jnp.float32))
    return p


# ----------------------------- pure-JAX reference --------------------------- #

def clip_align(x, y):
    dh = (y.shape[2] - x.shape[2]) // 2
    dw = (y.shape[3] - x.shape[3]) // 2
    if dh > 0 and dw > 0:
        y = y[:, :, dh:-dh, dw:-dw]
    return y


def _conv2d_ref(x, w, b, apply_elu):
    N, Cin, H, W = x.shape
    Cout, _, KH, KW = w.shape
    Ho, Wo = H - KH + 1, W - KW + 1
    out = jnp.zeros((N, Cout, Ho, Wo), jnp.float32) + b[None, :, None, None]
    for kh in range(KH):
        for kw in range(KW):
            out = out + jnp.einsum(
                "nchw,oc->nohw", x[:, :, kh:kh + Ho, kw:kw + Wo], w[:, :, kh, kw])
    return _elu(out) if apply_elu else out


def _convt_ref(x, w, b):
    N, Cin, H, W = x.shape
    _, Cout, _, _ = w.shape
    planes = jnp.einsum("nchw,cokl->noklhw", x, w) + b[None, :, None, None, None, None]
    return planes.transpose(0, 1, 4, 2, 5, 3).reshape(N, Cout, 2 * H, 2 * W)


def up_module_forward_ref(params, x, y):
    x = _convt_ref(x, params["convT_w"], params["convT_b"])
    if y.shape[2] % 2 == 1:
        y = _conv2d_ref(y, params["norm_w"], params["norm_b"], apply_elu=True)
    y = clip_align(x, y)
    x = jnp.concatenate([x, y], axis=1)
    for w, b in zip(params["conv_ws"], params["conv_bs"]):
        x = _conv2d_ref(x, w, b, apply_elu=True)
    return x


# ----------------------------- main ----------------------------------------- #

if __name__ == "__main__":
    key = jax.random.PRNGKey(0)
    kx, ky, kp = jax.random.split(key, 3)

    in_dims, out_dims, repeats = 4, 4, 1
    # x upsamples 8x8 -> 16x16; y is 19x19 (odd H -> normconv path) -> 18x18 -> clipped to 16x16
    x = jax.random.normal(kx, (2, in_dims, 8, 8), jnp.float32)
    y = jax.random.normal(ky, (2, out_dims, 19, 19), jnp.float32)

    params = init_params(kp, in_dims, out_dims, repeats=repeats)

    out = up_module_forward(params, x, y)
    out = jax.block_until_ready(out)

    ref = up_module_forward_ref(params, x, y)
    assert out.shape == (2, out_dims, 12, 12), out.shape
    err = float(jnp.max(jnp.abs(out - ref)))
    assert jnp.allclose(out, ref, atol=1e-3, rtol=1e-3), err

    print("KERNEL_OK")
</pallas_src>

<mosaic_0001>
module attributes {stable_mosaic.version = 11 : i64} {
  func.func @kernel(%arg0: i32, %arg1: memref<1x4x64xf32, #tpu.memory_space<vmem>>, %arg2: memref<1x4x384xf32, #tpu.memory_space<vmem>>, %arg3: memref<16x4xf32, #tpu.memory_space<vmem>>, %arg4: memref<4x1xf32, #tpu.memory_space<vmem>>, %arg5: memref<4x64x384xf32, #tpu.memory_space<vmem>>, %arg6: memref<4x4x4xf32, #tpu.memory_space<vmem>>, %arg7: memref<4x1xf32, #tpu.memory_space<vmem>>, %arg8: memref<9x4x8xf32, #tpu.memory_space<vmem>>, %arg9: memref<4x1xf32, #tpu.memory_space<vmem>>, %arg10: memref<9x4x4xf32, #tpu.memory_space<vmem>>, %arg11: memref<4x1xf32, #tpu.memory_space<vmem>>, %arg12: memref<1x4x384xf32, #tpu.memory_space<vmem>>) attributes {dimension_semantics = [#tpu.dimension_semantics<parallel>], iteration_bounds = array<i64: 2>, scalar_prefetch = 0 : i64, scratch_operands = 0 : i64, tpu.core_type = #tpu.core_type<tc>, window_params = [{transform_indices = @transform_0, window_bounds = array<i64: 1, 4, 64>}, {transform_indices = @transform_1, window_bounds = array<i64: 1, 4, 384>}, {pipeline_mode = #tpu.pipeline_mode<synchronous>, transform_indices = @transform_2, window_bounds = array<i64: 16, 4>}, {pipeline_mode = #tpu.pipeline_mode<synchronous>, transform_indices = @transform_3, window_bounds = array<i64: 4, 1>}, {pipeline_mode = #tpu.pipeline_mode<synchronous>, transform_indices = @transform_4, window_bounds = array<i64: 4, 64, 384>}, {pipeline_mode = #tpu.pipeline_mode<synchronous>, transform_indices = @transform_5, window_bounds = array<i64: 4, 4, 4>}, {pipeline_mode = #tpu.pipeline_mode<synchronous>, transform_indices = @transform_6, window_bounds = array<i64: 4, 1>}, {pipeline_mode = #tpu.pipeline_mode<synchronous>, transform_indices = @transform_7, window_bounds = array<i64: 9, 4, 8>}, {pipeline_mode = #tpu.pipeline_mode<synchronous>, transform_indices = @transform_8, window_bounds = array<i64: 4, 1>}, {pipeline_mode = #tpu.pipeline_mode<synchronous>, transform_indices = @transform_9, window_bounds = array<i64: 9, 4, 4>}, {pipeline_mode = #tpu.pipeline_mode<synchronous>, transform_indices = @transform_10, window_bounds = array<i64: 4, 1>}, {transform_indices = @transform_11, window_bounds = array<i64: 1, 4, 384>}]} {
    %c0 = arith.constant 0 : index
    %c0_0 = arith.constant 0 : index
    %c0_1 = arith.constant 0 : index
    %0 = vector.load %arg1[%c0, %c0_0, %c0_1] : memref<1x4x64xf32, #tpu.memory_space<vmem>>, vector<1x4x64xf32>
    %1 = vector.shape_cast %0 : vector<1x4x64xf32> to vector<4x64xf32>
    %c0_2 = arith.constant 0 : index
    %c0_3 = arith.constant 0 : index
    %c0_4 = arith.constant 0 : index
    %2 = vector.load %arg2[%c0_2, %c0_3, %c0_4] : memref<1x4x384xf32, #tpu.memory_space<vmem>>, vector<1x4x384xf32>
    %3 = vector.shape_cast %2 : vector<1x4x384xf32> to vector<4x384xf32>
    %c0_5 = arith.constant 0 : index
    %c0_6 = arith.constant 0 : index
    %4 = vector.load %arg3[%c0_5, %c0_6] : memref<16x4xf32, #tpu.memory_space<vmem>>, vector<16x4xf32>
    %cst = arith.constant dense<0.000000e+00> : vector<16x64xf32>
    %5 = tpu.matmul %4, %1, %cst {dimension_numbers = #tpu.dot_dimension_numbers<[1], [0], [0], [1], [0, 0, 1, 1], [], []>} : vector<16x4xf32>, vector<4x64xf32>, vector<16x64xf32> -> vector<16x64xf32>
    %cst_7 = arith.constant 0.000000e+00 : f32
    %6 = vector.broadcast %cst_7 : f32 to vector<4x384xf32>
    %c0_8 = arith.constant 0 : index
    %c0_9 = arith.constant 0 : index
    %7 = vector.load %arg4[%c0_8, %c0_9] : memref<4x1xf32, #tpu.memory_space<vmem>>, vector<4x1xf32>
    %8 = vector.broadcast %7 : vector<4x1xf32> to vector<4x384xf32>
    %9 = arith.addf %6, %8 : vector<4x384xf32>
    %10 = vector.extract_strided_slice %5 {offsets = [0, 0], sizes = [4, 64], strides = [1, 1]} : vector<16x64xf32> to vector<4x64xf32>
    %c0_10 = arith.constant 0 : index
    %c0_11 = arith.constant 0 : index
    %c0_12 = arith.constant 0 : index
    %11 = vector.load %arg5[%c0_10, %c0_11, %c0_12] : memref<4x64x384xf32, #tpu.memory_space<vmem>>, vector<1x64x384xf32>
    %12 = vector.shape_cast %11 : vector<1x64x384xf32> to vector<64x384xf32>
    %cst_13 = arith.constant dense<0.000000e+00> : vector<4x384xf32>
    %13 = tpu.matmul %10, %12, %cst_13 {dimension_numbers = #tpu.dot_dimension_numbers<[1], [0], [0], [1], [0, 0, 1, 1], [], []>} : vector<4x64xf32>, vector<64x384xf32>, vector<4x384xf32> -> vector<4x384xf32>
    %14 = arith.addf %9, %13 : vector<4x384xf32>
    %15 = vector.extract_strided_slice %5 {offsets = [4, 0], sizes = [4, 64], strides = [1, 1]} : vector<16x64xf32> to vector<4x64xf32>
    %c1 = arith.constant 1 : index
    %c0_14 = arith.constant 0 : index
    %c0_15 = arith.constant 0 : index
    %16 = vector.load %arg5[%c1, %c0_14, %c0_15] : memref<4x64x384xf32, #tpu.memory_space<vmem>>, vector<1x64x384xf32>
    %17 = vector.shape_cast %16 : vector<1x64x384xf32> to vector<64x384xf32>
    %cst_16 = arith.constant dense<0.000000e+00> : vector<4x384xf32>
    %18 = tpu.matmul %15, %17, %cst_16 {dimension_numbers = #tpu.dot_dimension_numbers<[1], [0], [0], [1], [0, 0, 1, 1], [], []>} : vector<4x64xf32>, vector<64x384xf32>, vector<4x384xf32> -> vector<4x384xf32>
    %19 = arith.addf %14, %18 : vector<4x384xf32>
    %20 = vector.extract_strided_slice %5 {offsets = [8, 0], sizes = [4, 64], strides = [1, 1]} : vector<16x64xf32> to vector<4x64xf32>
    %c2 = arith.constant 2 : index
    %c0_17 = arith.constant 0 : index
    %c0_18 = arith.constant 0 : index
    %21 = vector.load %arg5[%c2, %c0_17, %c0_18] : memref<4x64x384xf32, #tpu.memory_space<vmem>>, vector<1x64x384xf32>
    %22 = vector.shape_cast %21 : vector<1x64x384xf32> to vector<64x384xf32>
    %cst_19 = arith.constant dense<0.000000e+00> : vector<4x384xf32>
    %23 = tpu.matmul %20, %22, %cst_19 {dimension_numbers = #tpu.dot_dimension_numbers<[1], [0], [0], [1], [0, 0, 1, 1], [], []>} : vector<4x64xf32>, vector<64x384xf32>, vector<4x384xf32> -> vector<4x384xf32>
    %24 = arith.addf %19, %23 : vector<4x384xf32>
    %25 = vector.extract_strided_slice %5 {offsets = [12, 0], sizes = [4, 64], strides = [1, 1]} : vector<16x64xf32> to vector<4x64xf32>
    %c3 = arith.constant 3 : index
    %c0_20 = arith.constant 0 : index
    %c0_21 = arith.constant 0 : index
    %26 = vector.load %arg5[%c3, %c0_20, %c0_21] : memref<4x64x384xf32, #tpu.memory_space<vmem>>, vector<1x64x384xf32>
    %27 = vector.shape_cast %26 : vector<1x64x384xf32> to vector<64x384xf32>
    %cst_22 = arith.constant dense<0.000000e+00> : vector<4x384xf32>
    %28 = tpu.matmul %25, %27, %cst_22 {dimension_numbers = #tpu.dot_dimension_numbers<[1], [0], [0], [1], [0, 0, 1, 1], [], []>} : vector<4x64xf32>, vector<64x384xf32>, vector<4x384xf32> -> vector<4x384xf32>
    %29 = arith.addf %24, %28 : vector<4x384xf32>
    %cst_23 = arith.constant 0.000000e+00 : f32
    %30 = vector.broadcast %cst_23 : f32 to vector<4x384xf32>
    %c0_24 = arith.constant 0 : index
    %c0_25 = arith.constant 0 : index
    %31 = vector.load %arg7[%c0_24, %c0_25] : memref<4x1xf32, #tpu.memory_space<vmem>>, vector<4x1xf32>
    %32 = vector.broadcast %31 : vector<4x1xf32> to vector<4x384xf32>
    %33 = arith.addf %30, %32 : vector<4x384xf32>
    %c0_26 = arith.constant 0 : index
    %c0_27 = arith.constant 0 : index
    %c0_28 = arith.constant 0 : index
    %34 = vector.load %arg6[%c0_26, %c0_27, %c0_28] : memref<4x4x4xf32, #tpu.memory_space<vmem>>, vector<1x4x4xf32>
    %35 = vector.shape_cast %34 : vector<1x4x4xf32> to vector<4x4xf32>
    %cst_29 = arith.constant dense<0.000000e+00> : vector<4x384xf32>
    %36 = tpu.matmul %35, %3, %cst_29 {dimension_numbers = #tpu.dot_dimension_numbers<[1], [0], [0], [1], [0, 0, 1, 1], [], []>} : vector<4x4xf32>, vector<4x384xf32>, vector<4x384xf32> -> vector<4x384xf32>
    %37 = arith.addf %33, %36 : vector<4x384xf32>
    %c1_30 = arith.constant 1 : index
    %c0_31 = arith.constant 0 : index
    %c0_32 = arith.constant 0 : index
    %38 = vector.load %arg6[%c1_30, %c0_31, %c0_32] : memref<4x4x4xf32, #tpu.memory_space<vmem>>, vector<1x4x4xf32>
    %39 = vector.shape_cast %38 : vector<1x4x4xf32> to vector<4x4xf32>
    %40 = vector.extract_strided_slice %3 {offsets = [0, 1], sizes = [4, 383], strides = [1, 1]} : vector<4x384xf32> to vector<4x383xf32>
    %41 = vector.extract_strided_slice %3 {offsets = [0, 0], sizes = [4, 1], strides = [1, 1]} : vector<4x384xf32> to vector<4x1xf32>
    %42 = tpu.concatenate %40, %41 in 1 : vector<4x383xf32>, vector<4x1xf32> -> vector<4x384xf32>
    %cst_33 = arith.constant dense<0.000000e+00> : vector<4x384xf32>
    %43 = tpu.matmul %39, %42, %cst_33 {dimension_numbers = #tpu.dot_dimension_numbers<[1], [0], [0], [1], [0, 0, 1, 1], [], []>} : vector<4x4xf32>, vector<4x384xf32>, vector<4x384xf32> -> vector<4x384xf32>
    %44 = arith.addf %37, %43 : vector<4x384xf32>
    %c2_34 = arith.constant 2 : index
    %c0_35 = arith.constant 0 : index
    %c0_36 = arith.constant 0 : index
    %45 = vector.load %arg6[%c2_34, %c0_35, %c0_36] : memref<4x4x4xf32, #tpu.memory_space<vmem>>, vector<1x4x4xf32>
    %46 = vector.shape_cast %45 : vector<1x4x4xf32> to vector<4x4xf32>
    %47 = vector.extract_strided_slice %3 {offsets = [0, 19], sizes = [4, 365], strides = [1, 1]} : vector<4x384xf32> to vector<4x365xf32>
    %48 = vector.extract_strided_slice %3 {offsets = [0, 0], sizes = [4, 19], strides = [1, 1]} : vector<4x384xf32> to vector<4x19xf32>
    %49 = tpu.concatenate %47, %48 in 1 : vector<4x365xf32>, vector<4x19xf32> -> vector<4x384xf32>
    %cst_37 = arith.constant dense<0.000000e+00> : vector<4x384xf32>
    %50 = tpu.matmul %46, %49, %cst_37 {dimension_numbers = #tpu.dot_dimension_numbers<[1], [0], [0], [1], [0, 0, 1, 1], [], []>} : vector<4x4xf32>, vector<4x384xf32>, vector<4x384xf32> -> vector<4x384xf32>
    %51 = arith.addf %44, %50 : vector<4x384xf32>
    %c3_38 = arith.constant 3 : index
    %c0_39 = arith.constant 0 : index
    %c0_40 = arith.constant 0 : index
    %52 = vector.load %arg6[%c3_38, %c0_39, %c0_40] : memref<4x4x4xf32, #tpu.memory_space<vmem>>, vector<1x4x4xf32>
    %53 = vector.shape_cast %52 : vector<1x4x4xf32> to vector<4x4xf32>
    %54 = vector.extract_strided_slice %3 {offsets = [0, 20], sizes = [4, 364], strides = [1, 1]} : vector<4x384xf32> to vector<4x364xf32>
    %55 = vector.extract_strided_slice %3 {offsets = [0, 0], sizes = [4, 20], strides = [1, 1]} : vector<4x384xf32> to vector<4x20xf32>
    %56 = tpu.concatenate %54, %55 in 1 : vector<4x364xf32>, vector<4x20xf32> -> vector<4x384xf32>
    %cst_41 = arith.constant dense<0.000000e+00> : vector<4x384xf32>
    %57 = tpu.matmul %53, %56, %cst_41 {dimension_numbers = #tpu.dot_dimension_numbers<[1], [0], [0], [1], [0, 0, 1, 1], [], []>} : vector<4x4xf32>, vector<4x384xf32>, vector<4x384xf32> -> vector<4x384xf32>
    %58 = arith.addf %51, %57 : vector<4x384xf32>
    %cst_42 = arith.constant 0.000000e+00 : f32
    %59 = vector.broadcast %cst_42 : f32 to vector<4x384xf32>
    %60 = arith.cmpf ogt, %58, %59 : vector<4x384xf32>
    %cst_43 = arith.constant 0.000000e+00 : f32
    %61 = vector.broadcast %cst_43 : f32 to vector<4x384xf32>
    %62 = arith.minimumf %58, %61 : vector<4x384xf32>
    %63 = math.exp %62 : vector<4x384xf32>
    %cst_44 = arith.constant 1.000000e+00 : f32
    %64 = vector.broadcast %cst_44 : f32 to vector<4x384xf32>
    %65 = arith.subf %63, %64 : vector<4x384xf32>
    %66 = arith.select %60, %58, %65 : vector<4x384xi1>, vector<4x384xf32>
    %67 = tpu.concatenate %29, %66 in 0 : vector<4x384xf32>, vector<4x384xf32> -> vector<8x384xf32>
    %cst_45 = arith.constant 0.000000e+00 : f32
    %68 = vector.broadcast %cst_45 : f32 to vector<4x384xf32>
    %c0_46 = arith.constant 0 : index
    %c0_47 = arith.constant 0 : index
    %69 = vector.load %arg9[%c0_46, %c0_47] : memref<4x1xf32, #tpu.memory_space<vmem>>, vector<4x1xf32>
    %70 = vector.broadcast %69 : vector<4x1xf32> to vector<4x384xf32>
    %71 = arith.addf %68, %70 : vector<4x384xf32>
    %c0_48 = arith.constant 0 : index
    %c0_49 = arith.constant 0 : index
    %c0_50 = arith.constant 0 : index
    %72 = vector.load %arg8[%c0_48, %c0_49, %c0_50] : memref<9x4x8xf32, #tpu.memory_space<vmem>>, vector<1x4x8xf32>
    %73 = vector.shape_cast %72 : vector<1x4x8xf32> to vector<4x8xf32>
    %cst_51 = arith.constant dense<0.000000e+00> : vector<4x384xf32>
    %74 = tpu.matmul %73, %67, %cst_51 {dimension_numbers = #tpu.dot_dimension_numbers<[1], [0], [0], [1], [0, 0, 1, 1], [], []>} : vector<4x8xf32>, vector<8x384xf32>, vector<4x384xf32> -> vector<4x384xf32>
    %75 = arith.addf %71, %74 : vector<4x384xf32>
    %76 = vector.extract_strided_slice %67 {offsets = [0, 1], sizes = [8, 383], strides = [1, 1]} : vector<8x384xf32> to vector<8x383xf32>
    %77 = vector.extract_strided_slice %67 {offsets = [0, 0], sizes = [8, 1], strides = [1, 1]} : vector<8x384xf32> to vector<8x1xf32>
    %78 = tpu.concatenate %76, %77 in 1 : vector<8x383xf32>, vector<8x1xf32> -> vector<8x384xf32>
    %c1_52 = arith.constant 1 : index
    %c0_53 = arith.constant 0 : index
    %c0_54 = arith.constant 0 : index
    %79 = vector.load %arg8[%c1_52, %c0_53, %c0_54] : memref<9x4x8xf32, #tpu.memory_space<vmem>>, vector<1x4x8xf32>
    %80 = vector.shape_cast %79 : vector<1x4x8xf32> to vector<4x8xf32>
    %cst_55 = arith.constant dense<0.000000e+00> : vector<4x384xf32>
    %81 = tpu.matmul %80, %78, %cst_55 {dimension_numbers = #tpu.dot_dimension_numbers<[1], [0], [0], [1], [0, 0, 1, 1], [], []>} : vector<4x8xf32>, vector<8x384xf32>, vector<4x384xf32> -> vector<4x384xf32>
    %82 = arith.addf %75, %81 : vector<4x384xf32>
    %83 = vector.extract_strided_slice %67 {offsets = [0, 2], sizes = [8, 382], strides = [1, 1]} : vector<8x384xf32> to vector<8x382xf32>
    %84 = vector.extract_strided_slice %67 {offsets = [0, 0], sizes = [8, 2], strides = [1, 1]} : vector<8x384xf32> to vector<8x2xf32>
    %85 = tpu.concatenate %83, %84 in 1 : vector<8x382xf32>, vector<8x2xf32> -> vector<8x384xf32>
    %c2_56 = arith.constant 2 : index
    %c0_57 = arith.constant 0 : index
    %c0_58 = arith.constant 0 : index
    %86 = vector.load %arg8[%c2_56, %c0_57, %c0_58] : memref<9x4x8xf32, #tpu.memory_space<vmem>>, vector<1x4x8xf32>
    %87 = vector.shape_cast %86 : vector<1x4x8xf32> to vector<4x8xf32>
    %cst_59 = arith.constant dense<0.000000e+00> : vector<4x384xf32>
    %88 = tpu.matmul %87, %85, %cst_59 {dimension_numbers = #tpu.dot_dimension_numbers<[1], [0], [0], [1], [0, 0, 1, 1], [], []>} : vector<4x8xf32>, vector<8x384xf32>, vector<4x384xf32> -> vector<4x384xf32>
    %89 = arith.addf %82, %88 : vector<4x384xf32>
    %90 = vector.extract_strided_slice %67 {offsets = [0, 19], sizes = [8, 365], strides = [1, 1]} : vector<8x384xf32> to vector<8x365xf32>
    %91 = vector.extract_strided_slice %67 {offsets = [0, 0], sizes = [8, 19], strides = [1, 1]} : vector<8x384xf32> to vector<8x19xf32>
    %92 = tpu.concatenate %90, %91 in 1 : vector<8x365xf32>, vector<8x19xf32> -> vector<8x384xf32>
    %c3_60 = arith.constant 3 : index
    %c0_61 = arith.constant 0 : index
    %c0_62 = arith.constant 0 : index
    %93 = vector.load %arg8[%c3_60, %c0_61, %c0_62] : memref<9x4x8xf32, #tpu.memory_space<vmem>>, vector<1x4x8xf32>
    %94 = vector.shape_cast %93 : vector<1x4x8xf32> to vector<4x8xf32>
    %cst_63 = arith.constant dense<0.000000e+00> : vector<4x384xf32>
    %95 = tpu.matmul %94, %92, %cst_63 {dimension_numbers = #tpu.dot_dimension_numbers<[1], [0], [0], [1], [0, 0, 1, 1], [], []>} : vector<4x8xf32>, vector<8x384xf32>, vector<4x384xf32> -> vector<4x384xf32>
    %96 = arith.addf %89, %95 : vector<4x384xf32>
    %97 = vector.extract_strided_slice %67 {offsets = [0, 20], sizes = [8, 364], strides = [1, 1]} : vector<8x384xf32> to vector<8x364xf32>
    %98 = vector.extract_strided_slice %67 {offsets = [0, 0], sizes = [8, 20], strides = [1, 1]} : vector<8x384xf32> to vector<8x20xf32>
    %99 = tpu.concatenate %97, %98 in 1 : vector<8x364xf32>, vector<8x20xf32> -> vector<8x384xf32>
    %c4 = arith.constant 4 : index
    %c0_64 = arith.constant 0 : index
    %c0_65 = arith.constant 0 : index
    %100 = vector.load %arg8[%c4, %c0_64, %c0_65] : memref<9x4x8xf32, #tpu.memory_space<vmem>>, vector<1x4x8xf32>
    %101 = vector.shape_cast %100 : vector<1x4x8xf32> to vector<4x8xf32>
    %cst_66 = arith.constant dense<0.000000e+00> : vector<4x384xf32>
    %102 = tpu.matmul %101, %99, %cst_66 {dimension_numbers = #tpu.dot_dimension_numbers<[1], [0], [0], [1], [0, 0, 1, 1], [], []>} : vector<4x8xf32>, vector<8x384xf32>, vector<4x384xf32> -> vector<4x384xf32>
    %103 = arith.addf %96, %102 : vector<4x384xf32>
    %104 = vector.extract_strided_slice %67 {offsets = [0, 21], sizes = [8, 363], strides = [1, 1]} : vector<8x384xf32> to vector<8x363xf32>
    %105 = vector.extract_strided_slice %67 {offsets = [0, 0], sizes = [8, 21], strides = [1, 1]} : vector<8x384xf32> to vector<8x21xf32>
    %106 = tpu.concatenate %104, %105 in 1 : vector<8x363xf32>, vector<8x21xf32> -> vector<8x384xf32>
    %c5 = arith.constant 5 : index
    %c0_67 = arith.constant 0 : index
    %c0_68 = arith.constant 0 : index
    %107 = vector.load %arg8[%c5, %c0_67, %c0_68] : memref<9x4x8xf32, #tpu.memory_space<vmem>>, vector<1x4x8xf32>
    %108 = vector.shape_cast %107 : vector<1x4x8xf32> to vector<4x8xf32>
    %cst_69 = arith.constant dense<0.000000e+00> : vector<4x384xf32>
    %109 = tpu.matmul %108, %106, %cst_69 {dimension_numbers = #tpu.dot_dimension_numbers<[1], [0], [0], [1], [0, 0, 1, 1], [], []>} : vector<4x8xf32>, vector<8x384xf32>, vector<4x384xf32> -> vector<4x384xf32>
    %110 = arith.addf %103, %109 : vector<4x384xf32>
    %111 = vector.extract_strided_slice %67 {offsets = [0, 38], sizes = [8, 346], strides = [1, 1]} : vector<8x384xf32> to vector<8x346xf32>
    %112 = vector.extract_strided_slice %67 {offsets = [0, 0], sizes = [8, 38], strides = [1, 1]} : vector<8x384xf32> to vector<8x38xf32>
    %113 = tpu.concatenate %111, %112 in 1 : vector<8x346xf32>, vector<8x38xf32> -> vector<8x384xf32>
    %c6 = arith.constant 6 : index
    %c0_70 = arith.constant 0 : index
    %c0_71 = arith.constant 0 : index
    %114 = vector.load %arg8[%c6, %c0_70, %c0_71] : memref<9x4x8xf32, #tpu.memory_space<vmem>>, vector<1x4x8xf32>
    %115 = vector.shape_cast %114 : vector<1x4x8xf32> to vector<4x8xf32>
    %cst_72 = arith.constant dense<0.000000e+00> : vector<4x384xf32>
    %116 = tpu.matmul %115, %113, %cst_72 {dimension_numbers = #tpu.dot_dimension_numbers<[1], [0], [0], [1], [0, 0, 1, 1], [], []>} : vector<4x8xf32>, vector<8x384xf32>, vector<4x384xf32> -> vector<4x384xf32>
    %117 = arith.addf %110, %116 : vector<4x384xf32>
    %118 = vector.extract_strided_slice %67 {offsets = [0, 39], sizes = [8, 345], strides = [1, 1]} : vector<8x384xf32> to vector<8x345xf32>
    %119 = vector.extract_strided_slice %67 {offsets = [0, 0], sizes = [8, 39], strides = [1, 1]} : vector<8x384xf32> to vector<8x39xf32>
    %120 = tpu.concatenate %118, %119 in 1 : vector<8x345xf32>, vector<8x39xf32> -> vector<8x384xf32>
    %c7 = arith.constant 7 : index
    %c0_73 = arith.constant 0 : index
    %c0_74 = arith.constant 0 : index
    %121 = vector.load %arg8[%c7, %c0_73, %c0_74] : memref<9x4x8xf32, #tpu.memory_space<vmem>>, vector<1x4x8xf32>
    %122 = vector.shape_cast %121 : vector<1x4x8xf32> to vector<4x8xf32>
    %cst_75 = arith.constant dense<0.000000e+00> : vector<4x384xf32>
    %123 = tpu.matmul %122, %120, %cst_75 {dimension_numbers = #tpu.dot_dimension_numbers<[1], [0], [0], [1], [0, 0, 1, 1], [], []>} : vector<4x8xf32>, vector<8x384xf32>, vector<4x384xf32> -> vector<4x384xf32>
    %124 = arith.addf %117, %123 : vector<4x384xf32>
    %125 = vector.extract_strided_slice %67 {offsets = [0, 40], sizes = [8, 344], strides = [1, 1]} : vector<8x384xf32> to vector<8x344xf32>
    %126 = vector.extract_strided_slice %67 {offsets = [0, 0], sizes = [8, 40], strides = [1, 1]} : vector<8x384xf32> to vector<8x40xf32>
    %127 = tpu.concatenate %125, %126 in 1 : vector<8x344xf32>, vector<8x40xf32> -> vector<8x384xf32>
    %c8 = arith.constant 8 : index
    %c0_76 = arith.constant 0 : index
    %c0_77 = arith.constant 0 : index
    %128 = vector.load %arg8[%c8, %c0_76, %c0_77] : memref<9x4x8xf32, #tpu.memory_space<vmem>>, vector<1x4x8xf32>
    %129 = vector.shape_cast %128 : vector<1x4x8xf32> to vector<4x8xf32>
    %cst_78 = arith.constant dense<0.000000e+00> : vector<4x384xf32>
    %130 = tpu.matmul %129, %127, %cst_78 {dimension_numbers = #tpu.dot_dimension_numbers<[1], [0], [0], [1], [0, 0, 1, 1], [], []>} : vector<4x8xf32>, vector<8x384xf32>, vector<4x384xf32> -> vector<4x384xf32>
    %131 = arith.addf %124, %130 : vector<4x384xf32>
    %cst_79 = arith.constant 0.000000e+00 : f32
    %132 = vector.broadcast %cst_79 : f32 to vector<4x384xf32>
    %133 = arith.cmpf ogt, %131, %132 : vector<4x384xf32>
    %cst_80 = arith.constant 0.000000e+00 : f32
    %134 = vector.broadcast %cst_80 : f32 to vector<4x384xf32>
    %135 = arith.minimumf %131, %134 : vector<4x384xf32>
    %136 = math.exp %135 : vector<4x384xf32>
    %cst_81 = arith.constant 1.000000e+00 : f32
    %137 = vector.broadcast %cst_81 : f32 to vector<4x384xf32>
    %138 = arith.subf %136, %137 : vector<4x384xf32>
    %139 = arith.select %133, %131, %138 : vector<4x384xi1>, vector<4x384xf32>
    %cst_82 = arith.constant 0.000000e+00 : f32
    %140 = vector.broadcast %cst_82 : f32 to vector<4x384xf32>
    %c0_83 = arith.constant 0 : index
    %c0_84 = arith.constant 0 : index
    %141 = vector.load %arg11[%c0_83, %c0_84] : memref<4x1xf32, #tpu.memory_space<vmem>>, vector<4x1xf32>
    %142 = vector.broadcast %141 : vector<4x1xf32> to vector<4x384xf32>
    %143 = arith.addf %140, %142 : vector<4x384xf32>
    %c0_85 = arith.constant 0 : index
    %c0_86 = arith.constant 0 : index
    %c0_87 = arith.constant 0 : index
    %144 = vector.load %arg10[%c0_85, %c0_86, %c0_87] : memref<9x4x4xf32, #tpu.memory_space<vmem>>, vector<1x4x4xf32>
    %145 = vector.shape_cast %144 : vector<1x4x4xf32> to vector<4x4xf32>
    %cst_88 = arith.constant dense<0.000000e+00> : vector<4x384xf32>
    %146 = tpu.matmul %145, %139, %cst_88 {dimension_numbers = #tpu.dot_dimension_numbers<[1], [0], [0], [1], [0, 0, 1, 1], [], []>} : vector<4x4xf32>, vector<4x384xf32>, vector<4x384xf32> -> vector<4x384xf32>
    %147 = arith.addf %143, %146 : vector<4x384xf32>
    %148 = vector.extract_strided_slice %139 {offsets = [0, 1], sizes = [4, 383], strides = [1, 1]} : vector<4x384xf32> to vector<4x383xf32>
    %149 = vector.extract_strided_slice %139 {offsets = [0, 0], sizes = [4, 1], strides = [1, 1]} : vector<4x384xf32> to vector<4x1xf32>
    %150 = tpu.concatenate %148, %149 in 1 : vector<4x383xf32>, vector<4x1xf32> -> vector<4x384xf32>
    %c1_89 = arith.constant 1 : index
    %c0_90 = arith.constant 0 : index
    %c0_91 = arith.constant 0 : index
    %151 = vector.load %arg10[%c1_89, %c0_90, %c0_91] : memref<9x4x4xf32, #tpu.memory_space<vmem>>, vector<1x4x4xf32>
    %152 = vector.shape_cast %151 : vector<1x4x4xf32> to vector<4x4xf32>
    %cst_92 = arith.constant dense<0.000000e+00> : vector<4x384xf32>
    %153 = tpu.matmul %152, %150, %cst_92 {dimension_numbers = #tpu.dot_dimension_numbers<[1], [0], [0], [1], [0, 0, 1, 1], [], []>} : vector<4x4xf32>, vector<4x384xf32>, vector<4x384xf32> -> vector<4x384xf32>
    %154 = arith.addf %147, %153 : vector<4x384xf32>
    %155 = vector.extract_strided_slice %139 {offsets = [0, 2], sizes = [4, 382], strides = [1, 1]} : vector<4x384xf32> to vector<4x382xf32>
    %156 = vector.extract_strided_slice %139 {offsets = [0, 0], sizes = [4, 2], strides = [1, 1]} : vector<4x384xf32> to vector<4x2xf32>
    %157 = tpu.concatenate %155, %156 in 1 : vector<4x382xf32>, vector<4x2xf32> -> vector<4x384xf32>
    %c2_93 = arith.constant 2 : index
    %c0_94 = arith.constant 0 : index
    %c0_95 = arith.constant 0 : index
    %158 = vector.load %arg10[%c2_93, %c0_94, %c0_95] : memref<9x4x4xf32, #tpu.memory_space<vmem>>, vector<1x4x4xf32>
    %159 = vector.shape_cast %158 : vector<1x4x4xf32> to vector<4x4xf32>
    %cst_96 = arith.constant dense<0.000000e+00> : vector<4x384xf32>
    %160 = tpu.matmul %159, %157, %cst_96 {dimension_numbers = #tpu.dot_dimension_numbers<[1], [0], [0], [1], [0, 0, 1, 1], [], []>} : vector<4x4xf32>, vector<4x384xf32>, vector<4x384xf32> -> vector<4x384xf32>
    %161 = arith.addf %154, %160 : vector<4x384xf32>
    %162 = vector.extract_strided_slice %139 {offsets = [0, 19], sizes = [4, 365], strides = [1, 1]} : vector<4x384xf32> to vector<4x365xf32>
    %163 = vector.extract_strided_slice %139 {offsets = [0, 0], sizes = [4, 19], strides = [1, 1]} : vector<4x384xf32> to vector<4x19xf32>
    %164 = tpu.concatenate %162, %163 in 1 : vector<4x365xf32>, vector<4x19xf32> -> vector<4x384xf32>
    %c3_97 = arith.constant 3 : index
    %c0_98 = arith.constant 0 : index
    %c0_99 = arith.constant 0 : index
    %165 = vector.load %arg10[%c3_97, %c0_98, %c0_99] : memref<9x4x4xf32, #tpu.memory_space<vmem>>, vector<1x4x4xf32>
    %166 = vector.shape_cast %165 : vector<1x4x4xf32> to vector<4x4xf32>
    %cst_100 = arith.constant dense<0.000000e+00> : vector<4x384xf32>
    %167 = tpu.matmul %166, %164, %cst_100 {dimension_numbers = #tpu.dot_dimension_numbers<[1], [0], [0], [1], [0, 0, 1, 1], [], []>} : vector<4x4xf32>, vector<4x384xf32>, vector<4x384xf32> -> vector<4x384xf32>
    %168 = arith.addf %161, %167 : vector<4x384xf32>
    %169 = vector.extract_strided_slice %139 {offsets = [0, 20], sizes = [4, 364], strides = [1, 1]} : vector<4x384xf32> to vector<4x364xf32>
    %170 = vector.extract_strided_slice %139 {offsets = [0, 0], sizes = [4, 20], strides = [1, 1]} : vector<4x384xf32> to vector<4x20xf32>
    %171 = tpu.concatenate %169, %170 in 1 : vector<4x364xf32>, vector<4x20xf32> -> vector<4x384xf32>
    %c4_101 = arith.constant 4 : index
    %c0_102 = arith.constant 0 : index
    %c0_103 = arith.constant 0 : index
    %172 = vector.load %arg10[%c4_101, %c0_102, %c0_103] : memref<9x4x4xf32, #tpu.memory_space<vmem>>, vector<1x4x4xf32>
    %173 = vector.shape_cast %172 : vector<1x4x4xf32> to vector<4x4xf32>
    %cst_104 = arith.constant dense<0.000000e+00> : vector<4x384xf32>
    %174 = tpu.matmul %173, %171, %cst_104 {dimension_numbers = #tpu.dot_dimension_numbers<[1], [0], [0], [1], [0, 0, 1, 1], [], []>} : vector<4x4xf32>, vector<4x384xf32>, vector<4x384xf32> -> vector<4x384xf32>
    %175 = arith.addf %168, %174 : vector<4x384xf32>
    %176 = vector.extract_strided_slice %139 {offsets = [0, 21], sizes = [4, 363], strides = [1, 1]} : vector<4x384xf32> to vector<4x363xf32>
    %177 = vector.extract_strided_slice %139 {offsets = [0, 0], sizes = [4, 21], strides = [1, 1]} : vector<4x384xf32> to vector<4x21xf32>
    %178 = tpu.concatenate %176, %177 in 1 : vector<4x363xf32>, vector<4x21xf32> -> vector<4x384xf32>
    %c5_105 = arith.constant 5 : index
    %c0_106 = arith.constant 0 : index
    %c0_107 = arith.constant 0 : index
    %179 = vector.load %arg10[%c5_105, %c0_106, %c0_107] : memref<9x4x4xf32, #tpu.memory_space<vmem>>, vector<1x4x4xf32>
    %180 = vector.shape_cast %179 : vector<1x4x4xf32> to vector<4x4xf32>
    %cst_108 = arith.constant dense<0.000000e+00> : vector<4x384xf32>
    %181 = tpu.matmul %180, %178, %cst_108 {dimension_numbers = #tpu.dot_dimension_numbers<[1], [0], [0], [1], [0, 0, 1, 1], [], []>} : vector<4x4xf32>, vector<4x384xf32>, vector<4x384xf32> -> vector<4x384xf32>
    %182 = arith.addf %175, %181 : vector<4x384xf32>
    %183 = vector.extract_strided_slice %139 {offsets = [0, 38], sizes = [4, 346], strides = [1, 1]} : vector<4x384xf32> to vector<4x346xf32>
    %184 = vector.extract_strided_slice %139 {offsets = [0, 0], sizes = [4, 38], strides = [1, 1]} : vector<4x384xf32> to vector<4x38xf32>
    %185 = tpu.concatenate %183, %184 in 1 : vector<4x346xf32>, vector<4x38xf32> -> vector<4x384xf32>
    %c6_109 = arith.constant 6 : index
    %c0_110 = arith.constant 0 : index
    %c0_111 = arith.constant 0 : index
    %186 = vector.load %arg10[%c6_109, %c0_110, %c0_111] : memref<9x4x4xf32, #tpu.memory_space<vmem>>, vector<1x4x4xf32>
    %187 = vector.shape_cast %186 : vector<1x4x4xf32> to vector<4x4xf32>
    %cst_112 = arith.constant dense<0.000000e+00> : vector<4x384xf32>
    %188 = tpu.matmul %187, %185, %cst_112 {dimension_numbers = #tpu.dot_dimension_numbers<[1], [0], [0], [1], [0, 0, 1, 1], [], []>} : vector<4x4xf32>, vector<4x384xf32>, vector<4x384xf32> -> vector<4x384xf32>
    %189 = arith.addf %182, %188 : vector<4x384xf32>
    %190 = vector.extract_strided_slice %139 {offsets = [0, 39], sizes = [4, 345], strides = [1, 1]} : vector<4x384xf32> to vector<4x345xf32>
    %191 = vector.extract_strided_slice %139 {offsets = [0, 0], sizes = [4, 39], strides = [1, 1]} : vector<4x384xf32> to vector<4x39xf32>
    %192 = tpu.concatenate %190, %191 in 1 : vector<4x345xf32>, vector<4x39xf32> -> vector<4x384xf32>
    %c7_113 = arith.constant 7 : index
    %c0_114 = arith.constant 0 : index
    %c0_115 = arith.constant 0 : index
    %193 = vector.load %arg10[%c7_113, %c0_114, %c0_115] : memref<9x4x4xf32, #tpu.memory_space<vmem>>, vector<1x4x4xf32>
    %194 = vector.shape_cast %193 : vector<1x4x4xf32> to vector<4x4xf32>
    %cst_116 = arith.constant dense<0.000000e+00> : vector<4x384xf32>
    %195 = tpu.matmul %194, %192, %cst_116 {dimension_numbers = #tpu.dot_dimension_numbers<[1], [0], [0], [1], [0, 0, 1, 1], [], []>} : vector<4x4xf32>, vector<4x384xf32>, vector<4x384xf32> -> vector<4x384xf32>
    %196 = arith.addf %189, %195 : vector<4x384xf32>
    %197 = vector.extract_strided_slice %139 {offsets = [0, 40], sizes = [4, 344], strides = [1, 1]} : vector<4x384xf32> to vector<4x344xf32>
    %198 = vector.extract_strided_slice %139 {offsets = [0, 0], sizes = [4, 40], strides = [1, 1]} : vector<4x384xf32> to vector<4x40xf32>
    %199 = tpu.concatenate %197, %198 in 1 : vector<4x344xf32>, vector<4x40xf32> -> vector<4x384xf32>
    %c8_117 = arith.constant 8 : index
    %c0_118 = arith.constant 0 : index
    %c0_119 = arith.constant 0 : index
    %200 = vector.load %arg10[%c8_117, %c0_118, %c0_119] : memref<9x4x4xf32, #tpu.memory_space<vmem>>, vector<1x4x4xf32>
    %201 = vector.shape_cast %200 : vector<1x4x4xf32> to vector<4x4xf32>
    %cst_120 = arith.constant dense<0.000000e+00> : vector<4x384xf32>
    %202 = tpu.matmul %201, %199, %cst_120 {dimension_numbers = #tpu.dot_dimension_numbers<[1], [0], [0], [1], [0, 0, 1, 1], [], []>} : vector<4x4xf32>, vector<4x384xf32>, vector<4x384xf32> -> vector<4x384xf32>
    %203 = arith.addf %196, %202 : vector<4x384xf32>
    %cst_121 = arith.constant 0.000000e+00 : f32
    %204 = vector.broadcast %cst_121 : f32 to vector<4x384xf32>
    %205 = arith.cmpf ogt, %203, %204 : vector<4x384xf32>
    %cst_122 = arith.constant 0.000000e+00 : f32
    %206 = vector.broadcast %cst_122 : f32 to vector<4x384xf32>
    %207 = arith.minimumf %203, %206 : vector<4x384xf32>
    %208 = math.exp %207 : vector<4x384xf32>
    %cst_123 = arith.constant 1.000000e+00 : f32
    %209 = vector.broadcast %cst_123 : f32 to vector<4x384xf32>
    %210 = arith.subf %208, %209 : vector<4x384xf32>
    %211 = arith.select %205, %203, %210 : vector<4x384xi1>, vector<4x384xf32>
    %c0_124 = arith.constant 0 : index
    %c0_125 = arith.constant 0 : index
    %c0_126 = arith.constant 0 : index
    %212 = vector.load %arg12[%c0_124, %c0_125, %c0_126] : memref<1x4x384xf32, #tpu.memory_space<vmem>>, vector<1x4x384xf32>
    %213 = vector.shape_cast %212 : vector<1x4x384xf32> to vector<4x384xf32>
    %214 = vector.shape_cast %211 : vector<4x384xf32> to vector<1x4x384xf32>
    tpu.vector_store %arg12[%c0_124, %c0_125, %c0_126], %214 {strides = array<i32>} : memref<1x4x384xf32, #tpu.memory_space<vmem>>, vector<1x4x384xf32>,
    return
  }
  func.func @transform_0(%arg0: i32) -> (i32, i32, i32) {
    %c0_i32 = arith.constant 0 : i32
    %c0_i32_0 = arith.constant 0 : i32
    %c0_i32_1 = arith.constant 0 : i32
    return %arg0, %c0_i32, %c0_i32_0 : i32, i32, i32
  }
  func.func @transform_1(%arg0: i32) -> (i32, i32, i32) {
    %c0_i32 = arith.constant 0 : i32
    %c0_i32_0 = arith.constant 0 : i32
    %c0_i32_1 = arith.constant 0 : i32
    return %arg0, %c0_i32, %c0_i32_0 : i32, i32, i32
  }
  func.func @transform_2(%arg0: i32) -> (i32, i32) {
    %c0_i32 = arith.constant 0 : i32
    %c0_i32_0 = arith.constant 0 : i32
    %c0_i32_1 = arith.constant 0 : i32
    return %c0_i32, %c0_i32_0 : i32, i32
  }
  func.func @transform_3(%arg0: i32) -> (i32, i32) {
    %c0_i32 = arith.constant 0 : i32
    %c0_i32_0 = arith.constant 0 : i32
    %c0_i32_1 = arith.constant 0 : i32
    return %c0_i32, %c0_i32_0 : i32, i32
  }
  func.func @transform_4(%arg0: i32) -> (i32, i32, i32) {
    %c0_i32 = arith.constant 0 : i32
    %c0_i32_0 = arith.constant 0 : i32
    %c0_i32_1 = arith.constant 0 : i32
    %c0_i32_2 = arith.constant 0 : i32
    return %c0_i32, %c0_i32_0, %c0_i32_1 : i32, i32, i32
  }
  func.func @transform_5(%arg0: i32) -> (i32, i32, i32) {
    %c0_i32 = arith.constant 0 : i32
    %c0_i32_0 = arith.constant 0 : i32
    %c0_i32_1 = arith.constant 0 : i32
    %c0_i32_2 = arith.constant 0 : i32
    return %c0_i32, %c0_i32_0, %c0_i32_1 : i32, i32, i32
  }
  func.func @transform_6(%arg0: i32) -> (i32, i32) {
    %c0_i32 = arith.constant 0 : i32
    %c0_i32_0 = arith.constant 0 : i32
    %c0_i32_1 = arith.constant 0 : i32
    return %c0_i32, %c0_i32_0 : i32, i32
  }
  func.func @transform_7(%arg0: i32) -> (i32, i32, i32) {
    %c0_i32 = arith.constant 0 : i32
    %c0_i32_0 = arith.constant 0 : i32
    %c0_i32_1 = arith.constant 0 : i32
    %c0_i32_2 = arith.constant 0 : i32
    return %c0_i32, %c0_i32_0, %c0_i32_1 : i32, i32, i32
  }
  func.func @transform_8(%arg0: i32) -> (i32, i32) {
    %c0_i32 = arith.constant 0 : i32
    %c0_i32_0 = arith.constant 0 : i32
    %c0_i32_1 = arith.constant 0 : i32
    return %c0_i32, %c0_i32_0 : i32, i32
  }
  func.func @transform_9(%arg0: i32) -> (i32, i32, i32) {
    %c0_i32 = arith.constant 0 : i32
    %c0_i32_0 = arith.constant 0 : i32
    %c0_i32_1 = arith.constant 0 : i32
    %c0_i32_2 = arith.constant 0 : i32
    return %c0_i32, %c0_i32_0, %c0_i32_1 : i32, i32, i32
  }
  func.func @transform_10(%arg0: i32) -> (i32, i32) {
    %c0_i32 = arith.constant 0 : i32
    %c0_i32_0 = arith.constant 0 : i32
    %c0_i32_1 = arith.constant 0 : i32
    return %c0_i32, %c0_i32_0 : i32, i32
  }
  func.func @transform_11(%arg0: i32) -> (i32, i32, i32) {
    %c0_i32 = arith.constant 0 : i32
    %c0_i32_0 = arith.constant 0 : i32
    %c0_i32_1 = arith.constant 0 : i32
    return %arg0, %c0_i32, %c0_i32_0 : i32, i32, i32
  }
}

</mosaic_0001>

<bundles_post_ra>
// kernel: tpu_custom_call.1
= control target key start
LH: loop header
LB: loop body
LE: loop exit
PB: predicated region body
PF: predicated region fallthrough
CT: control target
= control target key end

     0   :  { %16 = vsyncpa [#allocation3], 0  ;;  %s6455_s0 = inlined_call_operand.vmem [shape: f32[2,4,64], index: 0, kind: input, shape index: {}]   ;;  %s6456_s1 = inlined_call_operand.vmem [shape: f32[2,4,384], index: 1, kind: input, shape index: {}]   ;;  %s6457_s2 = inlined_call_operand.vmem [shape: f32[16,4], index: 2, kind: input, shape index: {}]   ;;  %s6458_s3 = inlined_call_operand.vmem [shape: f32[4,1], index: 3, kind: input, shape index: {}]   ;;  %s6459_s4 = inlined_call_operand.hbm [shape: f32[4,64,384], index: 4, kind: input, shape index: {}]   ;;  %s6460_s5 = inlined_call_operand.vmem [shape: f32[4,4,4], index: 5, kind: input, shape index: {}]   ;;  %s6461_s6 = inlined_call_operand.vmem [shape: f32[4,1], index: 6, kind: input, shape index: {}]   ;;  %s6462_s7 = inlined_call_operand.vmem [shape: f32[9,4,8], index: 7, kind: input, shape index: {}]   ;;  %s6463_s8 = inlined_call_operand.vmem [shape: f32[4,1], index: 8, kind: input, shape index: {}]   ;;  %s6464_s9 = inlined_call_operand.vmem [shape: f32[9,4,4], index: 9, kind: input, shape index: {}]   ;;  %s6465_s10 = inlined_call_operand.vmem [shape: f32[4,1], index: 10, kind: input, shape index: {}]   ;;  %s6466_s11 = inlined_call_operand.hbm [shape: f32[2,4,384], index: 11, kind: output, shape index: {}]  }
   0x1   :  { %17 = vsyncpa [#allocation4], 0 }
   0x2   :  { %19 = vsyncpa [#allocation4 + $0x1], 0  ;;  %s5880_s17 = smov 0   ;;  %s5882_s18 = smov 0  }
   0x3   :  { %s5884_s19 = smov 0   ;;  %s5886_s20 = smov 0  }
   0x4 LB: > { %s5901_s21 = sadd.s32 4294967295, %s5802_s20   ;;  %s5001_s22 = sadd.s32 4294967294, %s5802_s20   ;;  %s5802_s20 = sphi %s5886_s20, %s6487_s20   ;;  %s5798_s19 = sphi %s5884_s19, %s6486_s19   ;;  %s5794_s18 = sphi %s5882_s18, %s6485_s18   ;;  %s5790_s17 = sphi %s5880_s17, %s6484_s17  }
   0x5   : > { %s5905_s23 = sadd.s32 1, %s5802_s20   ;;  %s273_s24 = sadd.s32 1, %s5798_s19 }
   0x6   : > { %s270_s25 = ssub.s32 %s5802_s20, %s5905_s23  ;;  %p283_p0 = scmp.ne.s32.totalorder %s5798_s19, %s5794_s18 }
   0x7   : > { %p271_p1 = scmp.eq.s32.totalorder %s270_s25, 0  ;;  %p284_p2 = scmp.eq.s32.totalorder %s5901_s21, 1 }
   0x8   : > { %p289_p3 = scmp.ne.s32.totalorder %s5794_s18, %s5790_s17  ;;  %p290_p4 = scmp.eq.s32.totalorder %s5001_s22, 1 }
   0x9   : > { %s5916_s26 = scalar_select %p271_p1, %s5798_s19, %s273_s24  }
   0xa   : > { %p5918_p5 = por %p284_p2, %p283_p0  ;;  %p5922_p6 = por %p290_p4, %p289_p3 }
   0xb   : > { %6472 = sst [smem:[#allocation8_spill]] %s5916_s26  ;;  %p5002_p7 = scmp.ge.s32.totalorder %s5802_s20, 1 }
   0xc   : > { %s6473_s27 = scalar_select %p5918_p5, 1, 0 }
   0xd   : > { %s6474_s28 = scalar_select %p5922_p6, 1, 0 }
   0xe   : > { %p297_p8 = scmp.lt.s32.totalorder %s5802_s20, 3  ;;  %p6467_p9 = scmp.eq.s32.totalorder %s5901_s21, 0 }
   0xf   : > { %s5804_s30 = smov [#allocation2]   ;;  %s5708_s16 = scalar_lea.hbm %s6459_s4, 12288 }
  0x10   : > { %p5929_p10 = pnand %p5002_p7, %p297_p8  ;;  %s315_s12 = sshll.u32 %s5804_s30, 4  ;;  %s316_s12 = int_to_ptr.vmem [resolvable:$true] %s315_s12 }
  0x11   : > { %p5709_p13 = scmp.ne.s32.totalorder %s6459_s4, %s5708_s16  ;;  %p5715_p3 = scmp.lt.u32.totalorder %s5708_s16, %s6459_s4 }
  0x12   : > { %s6475_s29 = scalar_select %p5929_p10, 1, 0 }
  0x13   : > { %p5629_p11 = pneg %p5929_p10 }
  0x15   : > { %p5937_p12 = pnand %p6467_p9, %p5629_p11 }
  0x17   : > { %p5710_p0 = pneg %p5937_p12 }
  0x19   : > { %p5711_p1 = pnand %p5710_p0, %p5709_p13 }
  0x1b   : > { %p5712_p2 = pneg %p5711_p1 }
  0x1d   : > { %p5717_p4 = pnand %p5715_p3, %p5712_p2 }
  0x1f   : > { %5720 = shalt.err (!%p5717_p4)
}
  0x20   : > { %s5721_s26 = scalar_lea.vmem %s316_s12, 12288  ;;  %p5729_p9 = scmp.lt.s32.totalorder %s316_s12, %s316_s12 }
  0x21   : > { %p5722_p7 = scmp.ne.s32.totalorder %s316_s12, %s5721_s26  ;;  %p5730_p6 = scmp.lt.s32.totalorder %s5721_s26, %s5721_s26 }
  0x23   : > { %p5724_p8 = pnand %p5722_p7, %p5710_p0  ;;  %p5731_p5 = por %p5730_p6, %p5729_p9 }
  0x25   : > { %p5725_p11 = pneg %p5724_p8 }
  0x27   : > { %p5732_p10 = pnand %p5731_p5, %p5725_p11 }
  0x29   : > { %5735 = shalt.err (!%p5732_p10)
}
  0x2a   : > { %s5805_s14 = smov 384   ;;  %s5806_s15 = smov 24  }
  0x2b   : > { %5632 = dma.hbm_to_vmem [thread:$0]  (!%p5937_p12), %s6459_s4, 12288, %s316_s12, [#allocation3], %s5805_s14, %s5805_s14, %s5806_s15  }
  0x2c   : > { %p6477_p13 = scmp.ne.s32.totalorder %s6475_s29, 0 }
  0x2d   : > { %p6478_p1 = scmp.eq.s32.totalorder (!%p6477_p13), %s5901_s21, 0 }
  0x2e   : > { %364 = sbr.rel (%p6477_p13) target bundleno = 1427 (0x593), region = 64 }
  0x35   : > { %5781 = dma.done.wait (%p6478_p1), [#allocation3], 12288   ;;  %p6479_p0 = pmov %p6478_p1 }
  0x36   : > { %p408_p5 = scmp.lt.s32.totalorder %s5901_s21, 1  ;;  %vm429_vm0 = vcmask 1043456   ;;  %vm422_vm1 = vcmask 31744   ;;  %v420_v2 = vld [vmem:[%s6457_s2] sm:$0xff]  ;;  %v421_v3 = vld [vmem:[%s6457_s2 + $0x8] sm:$0xff]  ;;  %v518_v9 = vld [vmem:[#allocation2 + $0x18] sm:$0xff] }
  0x37   : > { %5783 = vsyncadd (%p6479_p0), [#allocation3], 4294955008  ;;  %5219 = vmatprep.mubr.msk.f32.mxu0 %vm422_vm1, %v420_v2  ;;  %v516_v5 = vld [vmem:[#allocation2 + $0x8] sm:$0xff]  ;;  %v519_v7 = vld [vmem:[#allocation2 + $0x20] sm:$0xff]  ;;  %v5808_v15 = vmov 0.0|0.0   ;;  %s5810_s30 = smov 108  }
  0x38   : > { %s409_s26 = scalar_select %p408_p5, %s5901_s21, 1  ;;  %v515_v8 = vld [vmem:[#allocation2] sm:$0xff]  ;;  %v5408_v10 = vpack.c.bf16 %v519_v7, %v516_v5  ;;  %v517_v12 = vld [vmem:[#allocation2 + $0x10] sm:$0xff]  ;;  %v520_v13 = vld [vmem:[#allocation2 + $0x28] sm:$0xff]  ;;  %v5811_v46 = vmov 0.0   ;;  %vm5812_vm2 = vmmov 0  }
  0x39   : > { %v5410_v11 = vpack.c.bf16 %v518_v9, %v515_v8  ;;  %v522_v14 = vld [vmem:[#allocation2 + $0x38] sm:$0xff]  ;;  %v5425_v16 = vpack.c.bf16 %v520_v13, %v517_v12  ;;  %v525_v17 = vld [vmem:[#allocation2 + $0x50] sm:$0xff]  ;;  %v524_v19 = vld [vmem:[#allocation2 + $0x48] sm:$0xff]  ;;  %607 = vmatprep.mubr.f32.mxu1 %v5811_v46  ;;  %v5813_v49 = vmov 0   ;;  %vm539_vm3 = vcmask 523264   ;;  %s5815_s13 = smov 107  }
  0x3a   : > { %s5007_s16 = sshll.u32 %s409_s26, 2  ;;  %s5621_s25 = smul.u32 12, %s409_s26  ;;  %v521_v18 = vld [vmem:[#allocation2 + $0x30] sm:$0xff]  ;;  %5409 = vmatprep.subr.bf16.mxu1 %v5408_v10  ;;  %v5412_v20 = vpack.c.bf16 %v525_v17, %v522_v14  ;;  %v523_v21 = vld [vmem:[#allocation2 + $0x40] sm:$0xff]  ;;  %v526_v22 = vld [vmem:[#allocation2 + $0x58] sm:$0xff]  ;;  %5688 = vset.pattern.permute.xlu0 %v5813_v49  ;;  %vm1375_vm4 = vcmask 1039360  }
  0x3b   : > { %s411_s22 = scalar_lea.vmem %s6455_s0, %s5007_s16  ;;  %s5807_s16 = smov 127   ;;  %v528_v23 = vld [vmem:[#allocation2 + $0x68] sm:$0xff]  ;;  %5411 = vmatpush1.bf16.msra.mxu1 %v5410_v11  ;;  %v5414_v24 = vpack.c.bf16 %v524_v19, %v521_v18  ;;  %v531_v25 = vld [vmem:[#allocation2 + $0x80] sm:$0xff]  ;;  %v5428_v26 = vpack.c.bf16 %v526_v22, %v523_v21  ;;  %v530_v28 = vld [vmem:[#allocation2 + $0x78] sm:$0xff]  ;;  %5687 = vset.pattern.permute.xlu1 %v5813_v49  ;;  %vm1543_vm5 = vcmask 891904   ;;  %vm1711_vm6 = vcmask 883712  }
  0x3c   : > { %s416_s14 = scalar_lea.vmem %s6456_s1, %s5621_s25  ;;  %v417_v0 = vld [vmem:[%s411_s22] sm:$0xf]  ;;  %s5809_s25 = smov 109   ;;  %5413 = vmatprep.subr.bf16.mxu1 %v5412_v20  ;;  %v5416_v29 = vpack.c.bf16 %v531_v25, %v528_v23  ;;  %v529_v30 = vld [vmem:[#allocation2 + $0x70] sm:$0xff]  ;;  %v532_v31 = vld [vmem:[#allocation2 + $0x88] sm:$0xff]  ;;  %vm1909_vm10 = vcmask 64512  }
  0x3d   : > { %v5971_v1 = vld [vmem:[%s416_s14] sm:$0xff]  ;;  %5217 = vmatprep.subr.msk.mxu0 %vm429_vm0, %v417_v0  ;;  %v5986_v6 = vld [vmem:[%s416_s14 + $0x8] sm:$0xf]  ;;  %v534_v32 = vld [vmem:[#allocation2 + $0x98] sm:$0xff]  ;;  %v5431_v35 = vpack.c.bf16 %v532_v31, %v529_v30  ;;  %s5814_s26 = smov 126   ;;  %s6470_s22 = smov 90  }
  0x3e   : > { %v5983_v4 = vcombine.high %v5971_v1, %v5971_v1  ;;  %5218 = vmatpush3.msk.msra.mxu0 %vm429_vm0, %v417_v0  ;;  %1369 = vrot.lane.b32.xlu1 %v5971_v1, %s5807_s16  ;;  %v527_v27 = vld [vmem:[#allocation2 + $0x60] sm:$0xff]  ;;  %v537_v33 = vld [vmem:[#allocation2 + $0xb0] sm:$0xff]  ;;  %v536_v37 = vld [vmem:[#allocation2 + $0xa8] sm:$0xff]  ;;  %s5817_s29 = smov 89   ;;  %s5818_s12 = smov 88   ;;  %vm2228_vm11 = vcmask 1031168  }
  0x3f   : > { %5220 = vmatmul.mubr.msk.f32.vlgmr.msra.gmra.mrb[0].mxu0 %vm422_vm1, %v421_v3  ;;  %5424 = vmatprep.subr.bf16.mxu0 %v5808_v15  ;;  %v5418_v34 = vpack.c.bf16 %v530_v28, %v527_v27  ;;  %v533_v36 = vld [vmem:[#allocation2 + $0x90] sm:$0xff]  ;;  %v5420_v38 = vpack.c.bf16 %v537_v33, %v534_v32  ;;  %v535_v39 = vld [vmem:[#allocation2 + $0xa0] sm:$0xff]  ;;  %v538_v40 = vld [vmem:[#allocation2 + $0xb8] sm:$0xff]  ;;  %vm2715_vm12 = vcmask 875520   ;;  %vm2878_vm13 = vcmask 736256   ;;  %s405_s14 = sand.u32 1, %s5794_s18  }
  0x40   : > { %1371 = vrot.lane.b32.xlu0 %v5983_v4, %s5807_s16  ;;  %5426 = vmatpush3.bf16.msra.mxu0 %v5425_v16  ;;  %v5422_v41 = vpack.c.bf16 %v536_v37, %v533_v36  ;;  %v5434_v42 = vpack.c.bf16 %v538_v40, %v535_v39  ;;  %v689_v43 = vld [vmem:[#allocation2 + $0xc8] sm:$0xff]  ;;  %v692_v44 = vld [vmem:[#allocation2 + $0xe0] sm:$0xff]  ;;  %v691_v51 = vld [vmem:[#allocation2 + $0xd8] sm:$0xff]  ;;  %vm3041_vm14 = vcmask 728064   ;;  %vm3204_vm15 = vcmask 719872   ;;  %s5620_s15 = smul.u32 12, %s405_s14 }
  0x41   : > { %5427 = vmatprep.subr.bf16.mxu0 %v5808_v15  ;;  %5415 = vmatpush1.bf16.msra.mxu1 %v5414_v24  ;;  %v5436_v45 = vpack.c.bf16 %v692_v44, %v689_v43  ;;  %v508_v47 = vld [vmem:[%s6458_s3] sm:$0xf]  ;;  %v690_v52 = vld [vmem:[#allocation2 + $0xd0] sm:$0xff]  ;;  %v693_v53 = vld [vmem:[#allocation2 + $0xe8] sm:$0xff]  ;;  %s5622_s24 = smul.u32 192, %s5901_s21  ;;  %s4904_s21 = scalar_lea.sflag [#allocation4], %s405_s14 }
  0x42   : > { %1539 = vrot.lane.b32.xlu1 %v5983_v4, %s5809_s25  ;;  %5417 = vmatprep.subr.bf16.mxu1 %v5416_v29  ;;  %v1203_v48 = vld [vmem:[%s6461_s6] sm:$0xf]  ;;  %v695_v54 = vld [vmem:[#allocation2 + $0xf8] sm:$0xff]  ;;  %v698_v55 = vld [vmem:[#allocation2 + $0x110] sm:$0xff]  ;;  %v5453_v57 = vpack.c.bf16 %v693_v53, %v690_v52  ;;  %p6481_p9 = scmp.ne.s32.totalorder %s6473_s27, 0 }
  0x43   : > { %5238 = vmatprep.mubr.msk.f32.mxu0 %vm5812_vm2, %v5811_v46  ;;  %v688_v50 = vld [vmem:[#allocation2 + $0xc0] sm:$0xff]  ;;  %v694_v58 = vld [vmem:[#allocation2 + $0xf0] sm:$0xff]  ;;  %v5440_v60 = vpack.c.bf16 %v698_v55, %v695_v54  ;;  %v697_v61 = vld [vmem:[#allocation2 + $0x108] sm:$0xff] }
  0x44   : > { %1373 = vrot.lane.b32.xlu0 %v5986_v6, %s5807_s16  ;;  %5429 = vmatpush3.bf16.msra.mxu0 %v5428_v26  ;;  %v5438_v56 = vpack.c.bf16 %v691_v51, %v688_v50  ;;  %v696_v62 = vld [vmem:[#allocation2 + $0x100] sm:$0xff]  ;;  %v699_v63 = vld [vmem:[#allocation2 + $0x118] sm:$0xff]  ;;  %v701_v2 = vld [vmem:[#allocation2 + $0x128] sm:$0xff]  ;;  %v5442_v5 = vpack.c.bf16 %v697_v61, %v694_v58 }
  0x45   : > { %5430 = vmatprep.subr.bf16.mxu0 %v5808_v15  ;;  %5419 = vmatpush1.bf16.msra.mxu1 %v5418_v34  ;;  %v704_v3 = vld [vmem:[#allocation2 + $0x140] sm:$0xff]  ;;  %v5456_v7 = vpack.c.bf16 %v699_v63, %v696_v62  ;;  %v703_v10 = vld [vmem:[#allocation2 + $0x138] sm:$0xff]  ;;  %v702_v11 = vld [vmem:[#allocation2 + $0x130] sm:$0xff] }
  0x46   : > { %1537 = vrot.lane.b32.xlu1 %v5971_v1, %s5809_s25  ;;  %5421 = vmatprep.subr.bf16.mxu1 %v5420_v38  ;;  %v700_v8 = vld [vmem:[#allocation2 + $0x120] sm:$0xff]  ;;  %v5444_v9 = vpack.c.bf16 %v704_v3, %v701_v2  ;;  %v705_v12 = vld [vmem:[#allocation2 + $0x148] sm:$0xff]  ;;  %v707_v13 = vld [vmem:[#allocation2 + $0x158] sm:$0xff] }
  0x47   : > { %v710_v14 = vld [vmem:[#allocation2 + $0x170] sm:$0xff]  ;;  %v5446_v16 = vpack.c.bf16 %v703_v10, %v700_v8  ;;  %v5459_v17 = vpack.c.bf16 %v705_v12, %v702_v11  ;;  %v709_v20 = vld [vmem:[#allocation2 + $0x168] sm:$0xff]  ;;  %v708_v21 = vld [vmem:[#allocation2 + $0x160] sm:$0xff] }
  0x48   : > { %1541 = vrot.lane.b32.xlu0 %v5986_v6, %s5809_s25  ;;  %5432 = vmatpush3.bf16.msra.mxu0 %v5431_v35  ;;  %v706_v18 = vld [vmem:[#allocation2 + $0x150] sm:$0xff]  ;;  %v5448_v19 = vpack.c.bf16 %v710_v14, %v707_v13  ;;  %v711_v22 = vld [vmem:[#allocation2 + $0x178] sm:$0xff]  ;;  %v861_v23 = vld [vmem:[#allocation2 + $0x188] sm:$0xff] }
  0x49   : > { %5433 = vmatprep.subr.bf16.mxu0 %v5808_v15  ;;  %5423 = vmatpush1.bf16.msra.mxu1 %v5422_v41  ;;  %v864_v24 = vld [vmem:[#allocation2 + $0x1a0] sm:$0xff]  ;;  %v5450_v25 = vpack.c.bf16 %v709_v20, %v706_v18  ;;  %v5462_v26 = vpack.c.bf16 %v711_v22, %v708_v21  ;;  %v863_v29 = vld [vmem:[#allocation2 + $0x198] sm:$0xff]  ;;  %v862_v30 = vld [vmem:[#allocation2 + $0x190] sm:$0xff] }
  0x4a   : > { %1709 = vrot.lane.b32.xlu1 %v5986_v6, %s5810_s30  ;;  %5437 = vmatprep.subr.bf16.mxu1 %v5436_v45  ;;  %v860_v27 = vld [vmem:[#allocation2 + $0x180] sm:$0xff]  ;;  %v5464_v28 = vpack.c.bf16 %v864_v24, %v861_v23  ;;  %v865_v31 = vld [vmem:[#allocation2 + $0x1a8] sm:$0xff]  ;;  %v867_v32 = vld [vmem:[#allocation2 + $0x1b8] sm:$0xff] }
  0x4b   : > { %v870_v33 = vld [vmem:[#allocation2 + $0x1d0] sm:$0xff]  ;;  %v5466_v34 = vpack.c.bf16 %v863_v29, %v860_v27  ;;  %v5481_v35 = vpack.c.bf16 %v865_v31, %v862_v30  ;;  %v869_v39 = vld [vmem:[#allocation2 + $0x1c8] sm:$0xff]  ;;  %v868_v40 = vld [vmem:[#allocation2 + $0x1c0] sm:$0xff] }
  0x4c   : > { %1707 = vrot.lane.b32.xlu0 %v5983_v4, %s5810_s30  ;;  %5435 = vmatpush3.bf16.msra.mxu0 %v5434_v42  ;;  %v866_v36 = vld [vmem:[#allocation2 + $0x1b0] sm:$0xff]  ;;  %v5468_v38 = vpack.c.bf16 %v870_v33, %v867_v32  ;;  %v871_v41 = vld [vmem:[#allocation2 + $0x1d8] sm:$0xff]  ;;  %v873_v42 = vld [vmem:[#allocation2 + $0x1e8] sm:$0xff] }
  0x4d   : > { %5452 = vmatprep.subr.bf16.mxu0 %v5808_v15  ;;  %v876_v43 = vld [vmem:[#allocation2 + $0x200] sm:$0xff]  ;;  %v5470_v44 = vpack.c.bf16 %v869_v39, %v866_v36  ;;  %v5484_v45 = vpack.c.bf16 %v871_v41, %v868_v40  ;;  %v875_v49 = vld [vmem:[#allocation2 + $0x1f8] sm:$0xff]  ;;  %v874_v50 = vld [vmem:[#allocation2 + $0x1f0] sm:$0xff] }
  0x4e   : > { %1206 = vperm.xlu1 %5687, %v1203_v48   ;;  %v5472_v48 = vpack.c.bf16 %v876_v43, %v873_v42  ;;  %v877_v51 = vld [vmem:[#allocation2 + $0x208] sm:$0xff]  ;;  %v879_v52 = vld [vmem:[#allocation2 + $0x218] sm:$0xff]  ;;  %v882_v53 = vld [vmem:[#allocation2 + $0x230] sm:$0xff] }
  0x4f   : > { %v5487_v55 = vpack.c.bf16 %v877_v51, %v874_v50  ;;  %v881_v58 = vld [vmem:[#allocation2 + $0x228] sm:$0xff]  ;;  %v883_v61 = vld [vmem:[#allocation2 + $0x238] sm:$0xff]  ;;  %v1036_v63 = vld [vmem:[#allocation2 + $0x260] sm:$0xff] }
  0x50   : > { %1705 = vrot.lane.b32.xlu0 %v5971_v1, %s5810_s30  ;;  %v1033_v62 = vld [vmem:[#allocation2 + $0x248] sm:$0xff]  ;;  %v1032_v3 = vld [vmem:[#allocation2 + $0x240] sm:$0xff]  ;;  %v1034_v8 = vld [vmem:[#allocation2 + $0x250] sm:$0xff] }
  0x51   : > { %v1039_v10 = vld [vmem:[#allocation2 + $0x278] sm:$0xff]  ;;  %v1042_v11 = vld [vmem:[#allocation2 + $0x290] sm:$0xff]  ;;  %v1040_v18 = vld [vmem:[#allocation2 + $0x280] sm:$0xff] }
  0x52   : > { %v1038_v14 = vld [vmem:[#allocation2 + $0x270] sm:$0xff]  ;;  %v1045_v20 = vld [vmem:[#allocation2 + $0x2a8] sm:$0xff]  ;;  %v1048_v21 = vld [vmem:[#allocation2 + $0x2c0] sm:$0xff] }
  0x53   : > { %v1044_v24 = vld [vmem:[#allocation2 + $0x2a0] sm:$0xff]  ;;  %v1046_v27 = vld [vmem:[#allocation2 + $0x2b0] sm:$0xff]  ;;  %v1051_v29 = vld [vmem:[#allocation2 + $0x2d8] sm:$0xff] }
  0x54   : > { %511 = vperm.xlu0 %5688, %v508_v47   ;;  %v872_v47 = vld [vmem:[#allocation2 + $0x1e0] sm:$0xff]  ;;  %v1054_v30 = vld [vmem:[#allocation2 + $0x2f0] sm:$0xff] }
  0x55   : > { %v5474_v54 = vpack.c.bf16 %v875_v49, %v872_v47  ;;  %v1050_v33 = vld [vmem:[#allocation2 + $0x2d0] sm:$0xff]  ;;  %v1052_v36 = vld [vmem:[#allocation2 + $0x2e0] sm:$0xff] }
  0xb0   : > { %v1370_v41 = vpop.permute.xlu1 %1369 }
 0x112   : > { %v6021_v59 = vpop.f32.mrb[0].mxu0 }
 0x113   : > { %v499_v0 = vpop.f32.mrb[1].mxu0  ;;  %v1056_v43 = vrot.slane %v6021_v59, 4 }
 0x114   : > { %5012 = vmatmul.mubr.msk.f32.vlgmr.msra.gmra.mrb[0].mxu1 %vm539_vm3, %v499_v0  ;;  %5239 = vmatmul.mubr.msk.f32.vlgmr.msra.gmra.mrb[2].mxu0 %vm539_vm3, %v499_v0  ;;  %v712_v37 = vrot.slane %v499_v0, 4 }
 0x115   : > { %5439 = vmatpush1.bf16.msra.mxu1 %v5438_v56  ;;  %5454 = vmatpush3.bf16.msra.mxu0 %v5453_v57  ;;  %v878_v56 = vld [vmem:[#allocation2 + $0x210] sm:$0xff]  ;;  %v5476_v57 = vpack.c.bf16 %v882_v53, %v879_v52 }
 0x116   : > { %5441 = vmatprep.subr.bf16.mxu1 %v5440_v60  ;;  %5455 = vmatprep.subr.bf16.mxu0 %v5808_v15  ;;  %v880_v60 = vld [vmem:[#allocation2 + $0x220] sm:$0xff]  ;;  %v5478_v0 = vpack.c.bf16 %v881_v58, %v878_v56  ;;  %v5037_v58 = vld [vmem:[%s6460_s5 + $0xc] sm:$0xf] }
 0x117   : > { %779 = vmatprep.mubr.f32.mxu1 %v5811_v46  ;;  %5257 = vmatprep.mubr.msk.f32.mxu0 %vm5812_vm2, %v5811_v46  ;;  %v5490_v2 = vpack.c.bf16 %v883_v61, %v880_v60 }
 0x119   : > { %5443 = vmatpush1.bf16.msra.mxu1 %v5442_v5  ;;  %5457 = vmatpush3.bf16.msra.mxu0 %v5456_v7  ;;  %v5492_v5 = vpack.c.bf16 %v1036_v63, %v1033_v62  ;;  %v1035_v7 = vld [vmem:[#allocation2 + $0x258] sm:$0xff] }
 0x11a   : > { %5445 = vmatprep.subr.bf16.mxu1 %v5444_v9  ;;  %5458 = vmatprep.subr.bf16.mxu0 %v5808_v15  ;;  %v1037_v9 = vld [vmem:[#allocation2 + $0x268] sm:$0xff]  ;;  %v5494_v12 = vpack.c.bf16 %v1035_v7, %v1032_v3 }
 0x11b   : > { %v5509_v13 = vpack.c.bf16 %v1037_v9, %v1034_v8 }
 0x11d   : > { %5447 = vmatpush1.bf16.msra.mxu1 %v5446_v16  ;;  %5460 = vmatpush3.bf16.msra.mxu0 %v5459_v17  ;;  %v5496_v16 = vpack.c.bf16 %v1042_v11, %v1039_v10  ;;  %v1041_v17 = vld [vmem:[#allocation2 + $0x288] sm:$0xff] }
 0x11e   : > { %5449 = vmatprep.subr.bf16.mxu1 %v5448_v19  ;;  %5461 = vmatprep.subr.bf16.mxu0 %v5808_v15  ;;  %v1043_v19 = vld [vmem:[#allocation2 + $0x298] sm:$0xff]  ;;  %v5498_v22 = vpack.c.bf16 %v1041_v17, %v1038_v14 }
 0x11f   : > { %v5512_v23 = vpack.c.bf16 %v1043_v19, %v1040_v18 }
 0x121   : > { %5451 = vmatpush1.bf16.msra.mxu1 %v5450_v25  ;;  %5463 = vmatpush3.bf16.msra.mxu0 %v5462_v26  ;;  %v5500_v25 = vpack.c.bf16 %v1048_v21, %v1045_v20  ;;  %v1047_v26 = vld [vmem:[#allocation2 + $0x2b8] sm:$0xff] }
 0x122   : > { %5465 = vmatprep.subr.bf16.mxu1 %v5464_v28  ;;  %5480 = vmatprep.subr.bf16.mxu0 %v5808_v15  ;;  %v1049_v28 = vld [vmem:[#allocation2 + $0x2c8] sm:$0xff]  ;;  %v5502_v31 = vpack.c.bf16 %v1047_v26, %v1044_v24 }
 0x123   : > { %v5515_v32 = vpack.c.bf16 %v1049_v28, %v1046_v27 }
 0x124   : > { %5014 = vmatmul.mubr.msk.f32.vlgmr.msra.gmra.mrb[0].mxu1 %vm539_vm3, %v712_v37  ;;  %5258 = vmatmul.mubr.msk.f32.vlgmr.msra.gmra.mrb[2].mxu0 %vm539_vm3, %v712_v37  ;;  %v1055_v37 = vld [vmem:[#allocation2 + $0x2f8] sm:$0xff] }
 0x125   : > { %5467 = vmatpush1.bf16.msra.mxu1 %v5466_v34  ;;  %5482 = vmatpush3.bf16.msra.mxu0 %v5481_v35  ;;  %v5504_v34 = vpack.c.bf16 %v1054_v30, %v1051_v29  ;;  %v1053_v35 = vld [vmem:[#allocation2 + $0x2e8] sm:$0xff]  ;;  %v5518_v40 = vpack.c.bf16 %v1055_v37, %v1052_v36  ;;  %v1908_v36 = vld [vmem:[%s6462_s7] sm:$0xf] }
 0x126   : > { %5469 = vmatprep.subr.bf16.mxu1 %v5468_v38  ;;  %5483 = vmatprep.subr.bf16.mxu0 %v5808_v15  ;;  %v1372_v38 = vpop.permute.xlu0 %1371  ;;  %v5506_v39 = vpack.c.bf16 %v1053_v35, %v1050_v33 }
 0x127   : > { %951 = vmatprep.mubr.f32.mxu1 %v5811_v46  ;;  %5276 = vmatprep.mubr.msk.f32.mxu0 %vm5812_vm2, %v5811_v46 }
 0x129   : > { %5471 = vmatpush1.bf16.msra.mxu1 %v5470_v44  ;;  %5485 = vmatpush3.bf16.msra.mxu0 %v5484_v45  ;;  %v1540_v44 = vpop.permute.xlu1 %1539 }
 0x12a   : > { %5473 = vmatprep.subr.bf16.mxu1 %v5472_v48  ;;  %5486 = vmatprep.subr.bf16.mxu0 %v5808_v15  ;;  %v1374_v42 = vpop.permute.xlu0 %1373  ;;  %v5025_v48 = vld [vmem:[%s6460_s5 + $0x4] sm:$0xf] }
 0x12b   : > { %v1377_v45 = vsel %vm1375_vm4, %v1372_v38, %v1374_v42  ;;  %v1380_v47 = vsel %vm1375_vm4, %v1374_v42, %v1370_v41 }
 0x12d   : > { %5475 = vmatpush1.bf16.msra.mxu1 %v5474_v54  ;;  %5488 = vmatpush3.bf16.msra.mxu0 %v5487_v55  ;;  %v5031_v55 = vld [vmem:[%s6460_s5 + $0x8] sm:$0xf] }
 0x12e   : > { %5477 = vmatprep.subr.bf16.mxu1 %v5476_v57  ;;  %5489 = vmatprep.subr.bf16.mxu0 %v5808_v15 }
 0x131   : > { %5479 = vmatpush1.bf16.msra.mxu1 %v5478_v0  ;;  %5491 = vmatpush3.bf16.msra.mxu0 %v5490_v2 }
 0x132   : > { %5493 = vmatprep.subr.bf16.mxu1 %v5492_v5  ;;  %5508 = vmatprep.subr.bf16.mxu0 %v5808_v15 }
 0x134   : > { %5016 = vmatmul.mubr.msk.f32.vlgmr.msra.gmra.mrb[0].mxu1 %vm539_vm3, %v6021_v59  ;;  %5277 = vmatmul.mubr.msk.f32.vlgmr.msra.gmra.mrb[2].mxu0 %vm539_vm3, %v6021_v59  ;;  %v1376_v59 = vsel %vm1375_vm4, %v1370_v41, %v1372_v38  ;;  %v1901_v38 = vld [vmem:[%s6463_s8] sm:$0xf] }
 0x135   : > { %5495 = vmatpush1.bf16.msra.mxu1 %v5494_v12  ;;  %5510 = vmatpush3.bf16.msra.mxu0 %v5509_v13 }
 0x136   : > { %5497 = vmatprep.subr.bf16.mxu1 %v5496_v16  ;;  %5511 = vmatprep.subr.bf16.mxu0 %v5808_v15 }
 0x137   : > { %1123 = vmatprep.mubr.f32.mxu1 %v5811_v46  ;;  %5295 = vmatprep.mubr.msk.f32.mxu0 %vm5812_vm2, %v5811_v46 }
 0x139   : > { %5499 = vmatpush1.bf16.msra.mxu1 %v5498_v22  ;;  %5513 = vmatpush3.bf16.msra.mxu0 %v5512_v23 }
 0x13a   : > { %5501 = vmatprep.subr.bf16.mxu1 %v5500_v25  ;;  %5514 = vmatprep.subr.bf16.mxu0 %v5808_v15 }
 0x13d   : > { %5503 = vmatpush1.bf16.msra.mxu1 %v5502_v31  ;;  %5516 = vmatpush3.bf16.msra.mxu0 %v5515_v32 }
 0x13e   : > { %5505 = vmatprep.subr.bf16.mxu1 %v5504_v34  ;;  %5517 = vmatprep.subr.bf16.mxu0 %v5808_v15  ;;  %v1210_v15 = vld [vmem:[%s6460_s5] sm:$0xf] }
 0x141   : > { %5507 = vmatpush1.bf16.msra.mxu1 %v5506_v39  ;;  %5519 = vmatpush3.bf16.msra.mxu0 %v5518_v40 }
 0x142   : > { %5020 = vmatprep.subr.msk.mxu1 %vm429_vm0, %v5983_v4  ;;  %5298 = vmatprep.subr.mxu0 %v5811_v46  ;;  %v1542_v4 = vpop.permute.xlu0 %1541 }
 0x144   : > { %5018 = vmatmul.mubr.msk.f32.vlgmr.msra.gmra.mrb[0].mxu1 %vm539_vm3, %v1056_v43  ;;  %5296 = vmatmul.mubr.msk.f32.vlgmr.msra.gmra.mrb[2].mxu0 %vm539_vm3, %v1056_v43  ;;  %v5048_v43 = vld [vmem:[%s6462_s7 + $0x4] sm:$0xf] }
 0x145   : > { %5021 = vmatpush1.msk.msra.mxu1 %vm429_vm0, %v5971_v1  ;;  %1287 = vmatprep.mubr.f32.mxu1 %v5811_v46  ;;  %v1545_v1 = vsel %vm1543_vm5, %v1540_v44, %v1542_v4 }
 0x146   : > { %5299 = vmatpush3.msk.msra.mxu0 %vm429_vm0, %v5986_v6  ;;  %5300 = vmatprep.mubr.msk.f32.mxu0 %vm5812_vm2, %v5811_v46  ;;  %v1538_v6 = vpop.permute.xlu1 %1537  ;;  %v1708_v49 = vpop.permute.xlu0 %1707 }
 0x147   : > { %5026 = vmatprep.subr.msk.mxu1 %vm429_vm0, %v1377_v45  ;;  %5303 = vmatprep.subr.mxu0 %v5811_v46  ;;  %v1544_v51 = vsel %vm1543_vm5, %v1538_v6, %v1540_v44  ;;  %v1548_v52 = vsel %vm1543_vm5, %v1542_v4, %v1538_v6 }
 0x148   : > { %5022 = vmatmul.mubr.msk.f32.vlgmr.msra.gmra.mrb[2].mxu1 %vm422_vm1, %v1210_v15  ;;  %5301 = vmatmul.mubr.msk.f32.vlgmr.msra.gmra.mrb[4].mxu0 %vm422_vm1, %v1210_v15 }
 0x149   : > { %5027 = vmatpush1.msk.msra.mxu1 %vm429_vm0, %v1376_v59  ;;  %5304 = vmatpush3.msk.msra.mxu0 %vm429_vm0, %v1380_v47 }
 0x14a   : > { %1455 = vmatprep.mubr.f32.mxu1 %v5811_v46  ;;  %5305 = vmatprep.mubr.msk.f32.mxu0 %vm5812_vm2, %v5811_v46  ;;  %v1710_v50 = vpop.permute.xlu1 %1709  ;;  %v1706_v54 = vpop.permute.xlu0 %1705 }
 0x14b   : > { %5032 = vmatprep.subr.msk.mxu1 %vm429_vm0, %v1545_v1  ;;  %5308 = vmatprep.subr.mxu0 %v5811_v46  ;;  %v1713_v53 = vsel %vm1711_vm6, %v1708_v49, %v1710_v50  ;;  %v1712_v56 = vsel %vm1711_vm6, %v1706_v54, %v1708_v49  ;;  %v1716_v57 = vsel %vm1711_vm6, %v1710_v50, %v1706_v54 }
 0x14e   : > { %v1207_v0 = vpop.permute.xlu1 %1206  ;;  %v512_v20 = vpop.permute.xlu0 %511 }
 0x150   : > { %5028 = vmatmul.mubr.msk.f32.vlgmr.msra.gmra.mrb[2].mxu1 %vm422_vm1, %v5025_v48  ;;  %5306 = vmatmul.mubr.msk.f32.vlgmr.msra.gmra.mrb[4].mxu0 %vm422_vm1, %v5025_v48  ;;  %v5051_v48 = vld [vmem:[%s6462_s7 + $0x8] sm:$0xf] }
 0x151   : > { %5033 = vmatpush1.msk.msra.mxu1 %vm429_vm0, %v1544_v51  ;;  %5309 = vmatpush3.msk.msra.mxu0 %vm429_vm0, %v1548_v52 }
 0x152   : > { %1623 = vmatprep.mubr.f32.mxu1 %v5811_v46  ;;  %5310 = vmatprep.mubr.msk.f32.mxu0 %vm5812_vm2, %v5811_v46 }
 0x153   : > { %5038 = vmatprep.subr.msk.mxu1 %vm429_vm0, %v1713_v53  ;;  %5313 = vmatprep.subr.mxu0 %v5811_v46 }
 0x158   : > { %5034 = vmatmul.mubr.msk.f32.vlgmr.msra.gmra.mrb[2].mxu1 %vm422_vm1, %v5031_v55  ;;  %5311 = vmatmul.mubr.msk.f32.vlgmr.msra.gmra.mrb[4].mxu0 %vm422_vm1, %v5031_v55 }
 0x159   : > { %5039 = vmatpush1.msk.msra.mxu1 %vm429_vm0, %v1712_v56  ;;  %5314 = vmatpush3.msk.msra.mxu0 %vm429_vm0, %v1716_v57 }
 0x15a   : > { %1791 = vmatprep.mubr.f32.mxu1 %v5811_v46  ;;  %5315 = vmatprep.mubr.msk.f32.mxu0 %vm5812_vm2, %v5811_v46 }
 0x15b   : > { %5318 = vmatprep.subr.mxu0 %v5811_v46 }
 0x160   : > { %5040 = vmatmul.mubr.msk.f32.vlgmr.msra.gmra.mrb[2].mxu1 %vm422_vm1, %v5037_v58  ;;  %5316 = vmatmul.mubr.msk.f32.vlgmr.msra.gmra.mrb[4].mxu0 %vm422_vm1, %v5037_v58  ;;  %v5054_v58 = vld [vmem:[%s6462_s7 + $0xc] sm:$0xf] }
 0x161   : > { %5320 = vmatprep.mubr.msk.f32.mxu0 %vm5812_vm2, %v5811_v46  ;;  %1977 = vmatprep.mubr.f32.mxu1 %v5811_v46 }
 0x217   : > { %v1125_v60 = vpop.f32.mrb[0].mxu1  ;;  %v1196_v61 = vpop.f32.mrb[2].mxu0 }
 0x218   : > { %v1127_v62 = vpop.f32.mrb[1].mxu1  ;;  %v5297_v63 = vpop.f32.mrb[3].mxu0  ;;  %v5520_v26 = vadd.f32 %v1125_v60, %v512_v20  ;;  %v5522_v29 = vadd.f32 %v1196_v61, %v512_v20 }
 0x219   : > { %v5521_v32 = vadd.f32 %v1127_v62, %v512_v20 }
 0x233   : > { %v1793_v2 = vpop.f32.mrb[2].mxu1  ;;  %v1864_v3 = vpop.f32.mrb[4].mxu0 }
 0x234   : > { %v5523_v5 = vadd.f32 %v1793_v2, %v1207_v0  ;;  %v5525_v7 = vadd.f32 %v1864_v3, %v1207_v0  ;;  %v1795_v8 = vpop.f32.mrb[3].mxu1  ;;  %v5317_v9 = vpop.f32.mrb[5].mxu0  ;;  %v5057_v3 = vld [vmem:[%s6462_s7 + $0x10] sm:$0xf] }
 0x235   : > { %v5524_v10 = vadd.f32 %v1795_v8, %v1207_v0 }
 0x236   : > { %v1874_v11 = vmin.f32 %v5523_v5, 0.0  ;;  %v1876_v12 = vmin.f32 %v5525_v7, 0.0  ;;  %vm1871_vm7 = vcmp.gt.f32.partialorder %v5523_v5, 0.0  ;;  %vm1873_vm8 = vcmp.gt.f32.partialorder %v5525_v7, 0.0 }
 0x237   : > { %v1875_v13 = vmin.f32 %v5524_v10, 0.0  ;;  %vm1872_vm9 = vcmp.gt.f32.partialorder %v5524_v10, 0.0 }
 0x238   : > { %v1877_v14 = vmul.f32 1.442695, %v1874_v11  ;;  %v1881_v16 = vmul.f32 1.442695, %v1876_v12 }
 0x239   : > { %v1879_v17 = vmul.f32 1.442695, %v1875_v13 }
 0x23a   : > { %5690 = vpow2.f32 %v1877_v14  ;;  %v5060_v14 = vld [vmem:[%s6462_s7 + $0x14] sm:$0xf] }
 0x23b   : > { %5692 = vpow2.f32 %v1881_v16 }
 0x23c   : > { %5694 = vpow2.f32 %v1879_v17 }
 0x244   : > { %v5691_v18 = vpop.eup %5690 }
 0x245   : > { %v5693_v19 = vpop.eup %5692  ;;  %v5043_v21 = vadd.f32 -1.0, %v5691_v18 }
 0x246   : > { %v5695_v22 = vpop.eup %5694  ;;  %v5045_v23 = vadd.f32 -1.0, %v5693_v19 }
 0x247   : > { %v1886_v24 = vsel %vm1871_vm7, %v5523_v5, %v5043_v21  ;;  %v5044_v25 = vadd.f32 -1.0, %v5695_v22  ;;  %v5063_v21 = vld [vmem:[%s6462_s7 + $0x18] sm:$0xf] }
 0x248   : > { %v1892_v27 = vrot.slane %v1886_v24, 4  ;;  %v1888_v28 = vsel %vm1873_vm8, %v5525_v7, %v5045_v23 }
 0x249   : > { %v1894_v30 = vrot.slane %v1888_v28, 4  ;;  %v1887_v31 = vsel %vm1872_vm9, %v5524_v10, %v5044_v25  ;;  %v5066_v28 = vld [vmem:[%s6462_s7 + $0x1c] sm:$0xf] }
 0x24a   : > { %v1898_v33 = vsel %vm429_vm0, %v5520_v26, %v1892_v27  ;;  %v1893_v34 = vrot.slane %v1887_v31, 4  ;;  %v5069_v31 = vld [vmem:[%s6462_s7 + $0x20] sm:$0xf] }
 0x24b   : > { %v1900_v35 = vsel %vm429_vm0, %v5522_v29, %v1894_v30  ;;  %2060 = vrot.lane.b32.xlu0 %v1898_v33, %s5807_s16 }
 0x24c   : > { %v1899_v37 = vsel %vm429_vm0, %v5521_v32, %v1893_v34  ;;  %5319 = vmatpush3.msra.mxu0 %v1900_v35 }
 0x24d   : > { %2062 = vrot.lane.b32.xlu1 %v1899_v37, %s5807_s16  ;;  %1913 = vmatprep.subr.mxu1 %v1899_v37 }
 0x24e   : > { %1914 = vmatpush1.msra.mxu1 %v1898_v33  ;;  %5321 = vmatmul.mubr.msk.f32.vlgmr.msra.gmra.mrb[6].mxu0 %vm1909_vm10, %v1908_v36 }
 0x24f   : > { %2226 = vrot.lane.b32.xlu0 %v1900_v35, %s5814_s26  ;;  %5046 = vmatmul.mubr.msk.f32.vlgmr.msra.gmra.mrb[4].mxu1 %vm1909_vm10, %v1908_v36 }
 0x250   : > { %5323 = vmatprep.subr.mxu0 %v5811_v46  ;;  %5325 = vmatprep.mubr.msk.f32.mxu0 %vm5812_vm2, %v5811_v46 }
 0x251   : > { %2064 = vrot.lane.b32.xlu1 %v1900_v35, %s5807_s16  ;;  %2142 = vmatprep.mubr.f32.mxu1 %v5811_v46 }
 0x253   : > { %2387 = vrot.lane.b32.xlu0 %v1899_v37, %s5809_s25 }
 0x255   : > { %2224 = vrot.lane.b32.xlu1 %v1899_v37, %s5814_s26 }
 0x257   : > { %2385 = vrot.lane.b32.xlu0 %v1898_v33, %s5809_s25 }
 0x259   : > { %2222 = vrot.lane.b32.xlu1 %v1898_v33, %s5814_s26 }
 0x25b   : > { %2551 = vrot.lane.b32.xlu0 %v1900_v35, %s5810_s30 }
 0x25d   : > { %2389 = vrot.lane.b32.xlu1 %v1900_v35, %s5809_s25 }
 0x25f   : > { %2711 = vrot.lane.b32.xlu0 %v1899_v37, %s5815_s13 }
 0x261   : > { %2549 = vrot.lane.b32.xlu1 %v1899_v37, %s5810_s30 }
 0x263   : > { %2709 = vrot.lane.b32.xlu0 %v1898_v33, %s5815_s13 }
 0x265   : > { %2547 = vrot.lane.b32.xlu1 %v1898_v33, %s5810_s30 }
 0x267   : > { %2876 = vrot.lane.b32.xlu0 %v1900_v35, %s6470_s22 }
 0x269   : > { %2713 = vrot.lane.b32.xlu1 %v1900_v35, %s5815_s13 }
 0x26b   : > { %3037 = vrot.lane.b32.xlu0 %v1899_v37, %s5817_s29 }
 0x26d   : > { %2874 = vrot.lane.b32.xlu1 %v1899_v37, %s6470_s22 }
 0x26f   : > { %3035 = vrot.lane.b32.xlu0 %v1898_v33, %s5817_s29 }
 0x271   : > { %2872 = vrot.lane.b32.xlu1 %v1898_v33, %s6470_s22 }
 0x273   : > { %3202 = vrot.lane.b32.xlu0 %v1900_v35, %s5818_s12 }
 0x275   : > { %3039 = vrot.lane.b32.xlu1 %v1900_v35, %s5817_s29 }
 0x277   : > { %1904 = vperm.xlu0 %5688, %v1901_v38  }
 0x279   : > { %3200 = vrot.lane.b32.xlu1 %v1899_v37, %s5818_s12 }
 0x27d   : > { %3198 = vrot.lane.b32.xlu1 %v1898_v33, %s5818_s12 }
 0x2bd   : > { %v2061_v39 = vpop.permute.xlu0 %2060 }
 0x2bf   : > { %v2063_v40 = vpop.permute.xlu1 %2062 }
 0x2c0   : > { %v2066_v15 = vsel %vm1375_vm4, %v2061_v39, %v2063_v40 }
 0x2c1   : > { %v2227_v41 = vpop.permute.xlu0 %2226 }
 0x2c3   : > { %v2065_v42 = vpop.permute.xlu1 %2064 }
 0x2c4   : > { %v2072_v44 = vsel %vm1375_vm4, %v2065_v42, %v2061_v39  ;;  %v2067_v45 = vsel %vm1375_vm4, %v2063_v40, %v2065_v42 }
 0x2c5   : > { %2078 = vmatprep.subr.mxu1 %v2067_v45  ;;  %5324 = vmatpush3.msra.mxu0 %v2072_v44  ;;  %v2388_v4 = vpop.permute.xlu0 %2387 }
 0x2c6   : > { %2079 = vmatpush1.msra.mxu1 %v2066_v15  ;;  %5326 = vmatmul.mubr.msk.f32.vlgmr.msra.gmra.mrb[6].mxu0 %vm1909_vm10, %v5048_v43 }
 0x2c7   : > { %v2225_v59 = vpop.permute.xlu1 %2224  ;;  %5049 = vmatmul.mubr.msk.f32.vlgmr.msra.gmra.mrb[4].mxu1 %vm1909_vm10, %v5048_v43  ;;  %5328 = vmatprep.subr.mxu0 %v5811_v46 }
 0x2c8   : > { %v2230_v47 = vsel %vm2228_vm11, %v2225_v59, %v2227_v41  ;;  %5330 = vmatprep.mubr.msk.f32.mxu0 %vm5812_vm2, %v5811_v46  ;;  %2305 = vmatprep.mubr.f32.mxu1 %v5811_v46 }
 0x2c9   : > { %2241 = vmatprep.subr.mxu1 %v2230_v47  ;;  %v2386_v1 = vpop.permute.xlu0 %2385 }
 0x2ca   : > { %v2391_v55 = vsel %vm1543_vm5, %v2386_v1, %v2388_v4 }
 0x2cb   : > { %v2223_v6 = vpop.permute.xlu1 %2222 }
 0x2cc   : > { %v2229_v49 = vsel %vm2228_vm11, %v2223_v6, %v2225_v59  ;;  %v2235_v50 = vsel %vm2228_vm11, %v2227_v41, %v2223_v6  ;;  %v3386_v6 = vld [vmem:[%s6464_s9] sm:$0xf] }
 0x2cd   : > { %2242 = vmatpush1.msra.mxu1 %v2229_v49  ;;  %5329 = vmatpush3.msra.mxu0 %v2235_v50  ;;  %v2552_v51 = vpop.permute.xlu0 %2551 }
 0x2ce   : > { %5331 = vmatmul.mubr.msk.f32.vlgmr.msra.gmra.mrb[6].mxu0 %vm1909_vm10, %v5051_v48  ;;  %5333 = vmatprep.subr.mxu0 %v5811_v46 }
 0x2cf   : > { %v2390_v52 = vpop.permute.xlu1 %2389  ;;  %5052 = vmatmul.mubr.msk.f32.vlgmr.msra.gmra.mrb[4].mxu1 %vm1909_vm10, %v5051_v48  ;;  %5335 = vmatprep.mubr.msk.f32.mxu0 %vm5812_vm2, %v5811_v46 }
 0x2d0   : > { %v2397_v53 = vsel %vm1543_vm5, %v2390_v52, %v2386_v1  ;;  %v2392_v54 = vsel %vm1543_vm5, %v2388_v4, %v2390_v52  ;;  %2467 = vmatprep.mubr.f32.mxu1 %v5811_v46  ;;  %v3379_v52 = vld [vmem:[%s6465_s10] sm:$0xf] }
 0x2d1   : > { %2403 = vmatprep.subr.mxu1 %v2392_v54  ;;  %5334 = vmatpush3.msra.mxu0 %v2397_v53  ;;  %v2712_v56 = vpop.permute.xlu0 %2711 }
 0x2d2   : > { %2404 = vmatpush1.msra.mxu1 %v2391_v55  ;;  %5338 = vmatprep.subr.mxu0 %v5811_v46 }
 0x2d3   : > { %v2550_v57 = vpop.permute.xlu1 %2549 }
 0x2d4   : > { %v2554_v60 = vsel %vm1711_vm6, %v2550_v57, %v2552_v51 }
 0x2d5   : > { %2565 = vmatprep.subr.mxu1 %v2554_v60  ;;  %v2710_v61 = vpop.permute.xlu0 %2709 }
 0x2d6   : > { %5336 = vmatmul.mubr.msk.f32.vlgmr.msra.gmra.mrb[6].mxu0 %vm1909_vm10, %v5054_v58  ;;  %v2716_v9 = vsel %vm2715_vm12, %v2710_v61, %v2712_v56 }
 0x2d7   : > { %v2548_v62 = vpop.permute.xlu1 %2547  ;;  %5055 = vmatmul.mubr.msk.f32.vlgmr.msra.gmra.mrb[4].mxu1 %vm1909_vm10, %v5054_v58  ;;  %5340 = vmatprep.mubr.msk.f32.mxu0 %vm5812_vm2, %v5811_v46  ;;  %v5080_v58 = vld [vmem:[%s6464_s9 + $0x4] sm:$0xf] }
 0x2d8   : > { %v2553_v63 = vsel %vm1711_vm6, %v2548_v62, %v2550_v57  ;;  %v2559_v0 = vsel %vm1711_vm6, %v2552_v51, %v2548_v62  ;;  %2629 = vmatprep.mubr.f32.mxu1 %v5811_v46 }
 0x2d9   : > { %2566 = vmatpush1.msra.mxu1 %v2553_v63  ;;  %5339 = vmatpush3.msra.mxu0 %v2559_v0  ;;  %v2877_v8 = vpop.permute.xlu0 %2876 }
 0x2da   : > { %5343 = vmatprep.subr.mxu0 %v5811_v46 }
 0x2db   : > { %v2714_v2 = vpop.permute.xlu1 %2713 }
 0x2dc   : > { %v2722_v5 = vsel %vm2715_vm12, %v2714_v2, %v2710_v61  ;;  %v2717_v7 = vsel %vm2715_vm12, %v2712_v56, %v2714_v2 }
 0x2dd   : > { %2728 = vmatprep.subr.mxu1 %v2717_v7  ;;  %v3038_v12 = vpop.permute.xlu0 %3037 }
 0x2de   : > { %5341 = vmatmul.mubr.msk.f32.vlgmr.msra.gmra.mrb[6].mxu0 %vm1909_vm10, %v5057_v3 }
 0x2df   : > { %5344 = vmatpush3.msra.mxu0 %v2722_v5  ;;  %v2875_v10 = vpop.permute.xlu1 %2874  ;;  %5058 = vmatmul.mubr.msk.f32.vlgmr.msra.gmra.mrb[4].mxu1 %vm1909_vm10, %v5057_v3 }
 0x2e0   : > { %2729 = vmatpush1.msra.mxu1 %v2716_v9  ;;  %v2880_v11 = vsel %vm2878_vm13, %v2875_v10, %v2877_v8  ;;  %5345 = vmatprep.mubr.msk.f32.mxu0 %vm5812_vm2, %v5811_v46 }
 0x2e1   : > { %2891 = vmatprep.subr.mxu1 %v2880_v11  ;;  %5348 = vmatprep.subr.mxu0 %v5811_v46  ;;  %v3036_v20 = vpop.permute.xlu0 %3035 }
 0x2e2   : > { %2792 = vmatprep.mubr.f32.mxu1 %v5811_v46  ;;  %v3042_v24 = vsel %vm3041_vm14, %v3036_v20, %v3038_v12 }
 0x2e3   : > { %v2873_v13 = vpop.permute.xlu1 %2872 }
 0x2e4   : > { %v2885_v16 = vsel %vm2878_vm13, %v2877_v8, %v2873_v13  ;;  %v2879_v17 = vsel %vm2878_vm13, %v2873_v13, %v2875_v10  ;;  %v5086_v8 = vld [vmem:[%s6464_s9 + $0x8] sm:$0xf] }
 0x2e5   : > { %v3203_v25 = vpop.permute.xlu0 %3202 }
 0x2e6   : > { %5346 = vmatmul.mubr.msk.f32.vlgmr.msra.gmra.mrb[6].mxu0 %vm1909_vm10, %v5060_v14 }
 0x2e7   : > { %5349 = vmatpush3.msra.mxu0 %v2885_v16  ;;  %v3040_v18 = vpop.permute.xlu1 %3039  ;;  %5061 = vmatmul.mubr.msk.f32.vlgmr.msra.gmra.mrb[4].mxu1 %vm1909_vm10, %v5060_v14 }
 0x2e8   : > { %2892 = vmatpush1.msra.mxu1 %v2879_v17  ;;  %v3043_v19 = vsel %vm3041_vm14, %v3038_v12, %v3040_v18  ;;  %5350 = vmatprep.mubr.msk.f32.mxu0 %vm5812_vm2, %v5811_v46  ;;  %v3048_v23 = vsel %vm3041_vm14, %v3040_v18, %v3036_v20  ;;  %v5092_v17 = vld [vmem:[%s6464_s9 + $0xc] sm:$0xf] }
 0x2e9   : > { %3054 = vmatprep.subr.mxu1 %v3043_v19  ;;  %5353 = vmatprep.subr.mxu0 %v5811_v46 }
 0x2ea   : > { %2955 = vmatprep.mubr.f32.mxu1 %v5811_v46 }
 0x2eb   : > { %v3201_v22 = vpop.permute.xlu1 %3200 }
 0x2ec   : > { %v3206_v26 = vsel %vm3204_vm15, %v3201_v22, %v3203_v25 }
 0x2ee   : > { %5351 = vmatmul.mubr.msk.f32.vlgmr.msra.gmra.mrb[6].mxu0 %vm1909_vm10, %v5063_v21 }
 0x2ef   : > { %5354 = vmatpush3.msra.mxu0 %v3048_v23  ;;  %5064 = vmatmul.mubr.msk.f32.vlgmr.msra.gmra.mrb[4].mxu1 %vm1909_vm10, %v5063_v21  ;;  %v3199_v27 = vpop.permute.xlu1 %3198 }
 0x2f0   : > { %3055 = vmatpush1.msra.mxu1 %v3042_v24  ;;  %5355 = vmatprep.mubr.msk.f32.mxu0 %vm5812_vm2, %v5811_v46  ;;  %v3211_v29 = vsel %vm3204_vm15, %v3203_v25, %v3199_v27  ;;  %v3205_v30 = vsel %vm3204_vm15, %v3199_v27, %v3201_v22 }
 0x2f1   : > { %3217 = vmatprep.subr.mxu1 %v3206_v26  ;;  %5358 = vmatprep.subr.mxu0 %v5811_v46  ;;  %v5098_v26 = vld [vmem:[%s6464_s9 + $0x10] sm:$0xf] }
 0x2f2   : > { %3118 = vmatprep.mubr.f32.mxu1 %v5811_v46 }
 0x2f6   : > { %5356 = vmatmul.mubr.msk.f32.vlgmr.msra.gmra.mrb[6].mxu0 %vm1909_vm10, %v5066_v28  ;;  %v1905_v32 = vpop.permute.xlu0 %1904 }
 0x2f7   : > { %5359 = vmatpush3.msra.mxu0 %v3211_v29  ;;  %5067 = vmatmul.mubr.msk.f32.vlgmr.msra.gmra.mrb[4].mxu1 %vm1909_vm10, %v5066_v28 }
 0x2f8   : > { %3218 = vmatpush1.msra.mxu1 %v3205_v30  ;;  %5360 = vmatprep.mubr.msk.f32.mxu0 %vm5812_vm2, %v5811_v46 }
 0x2f9   : > { %3281 = vmatprep.mubr.f32.mxu1 %v5811_v46  ;;  %5363 = vmatprep.subr.mxu0 %v5811_v46 }
 0x2fe   : > { %5361 = vmatmul.mubr.msk.f32.vlgmr.msra.gmra.mrb[6].mxu0 %vm1909_vm10, %v5069_v31 }
 0x2ff   : > { %5070 = vmatmul.mubr.msk.f32.vlgmr.msra.gmra.mrb[4].mxu1 %vm1909_vm10, %v5069_v31  ;;  %5365 = vmatprep.mubr.msk.f32.mxu0 %vm5812_vm2, %v5811_v46 }
 0x300   : > { %3463 = vmatprep.mubr.f32.mxu1 %v5811_v46 }
 0x3d1   : > { %v3354_v33 = vpop.f32.mrb[6].mxu0 }
 0x3d2   : > { %v5528_v34 = vadd.f32 %v3354_v33, %v1905_v32  ;;  %v3283_v35 = vpop.f32.mrb[4].mxu1  ;;  %v5362_v36 = vpop.f32.mrb[7].mxu0  ;;  %v5104_v33 = vld [vmem:[%s6464_s9 + $0x14] sm:$0xf] }
 0x3d3   : > { %v5526_v37 = vadd.f32 %v3283_v35, %v1905_v32  ;;  %v3285_v38 = vpop.f32.mrb[5].mxu1 }
 0x3d4   : > { %v3366_v39 = vmin.f32 %v5528_v34, 0.0  ;;  %v5527_v40 = vadd.f32 %v3285_v38, %v1905_v32  ;;  %vm3363_vm3 = vcmp.gt.f32.partialorder %v5528_v34, 0.0 }
 0x3d5   : > { %v3364_v41 = vmin.f32 %v5526_v37, 0.0  ;;  %vm3361_vm8 = vcmp.gt.f32.partialorder %v5526_v37, 0.0 }
 0x3d6   : > { %v3371_v42 = vmul.f32 1.442695, %v3366_v39  ;;  %v3365_v43 = vmin.f32 %v5527_v40, 0.0  ;;  %vm3362_vm7 = vcmp.gt.f32.partialorder %v5527_v40, 0.0  ;;  %v5110_v39 = vld [vmem:[%s6464_s9 + $0x18] sm:$0xf] }
 0x3d7   : > { %v3367_v44 = vmul.f32 1.442695, %v3364_v41 }
 0x3d8   : > { %5696 = vpow2.f32 %v3371_v42  ;;  %v3369_v45 = vmul.f32 1.442695, %v3365_v43 }
 0x3d9   : > { %5698 = vpow2.f32 %v3367_v44 }
 0x3da   : > { %5700 = vpow2.f32 %v3369_v45 }
 0x3e2   : > { %v5697_v15 = vpop.eup %5696 }
 0x3e3   : > { %v5699_v4 = vpop.eup %5698  ;;  %v5074_v59 = vadd.f32 -1.0, %v5697_v15  ;;  %v5116_v15 = vld [vmem:[%s6464_s9 + $0x1c] sm:$0xf] }
 0x3e4   : > { %v5701_v47 = vpop.eup %5700  ;;  %v5072_v1 = vadd.f32 -1.0, %v5699_v4 }
 0x3e5   : > { %v3378_v48 = vsel %vm3363_vm3, %v5528_v34, %v5074_v59  ;;  %v5073_v49 = vadd.f32 -1.0, %v5701_v47  ;;  %v5122_v47 = vld [vmem:[%s6464_s9 + $0x20] sm:$0xf] }
 0x3e6   : > { %3547 = vrot.lane.b32.xlu0 %v3378_v48, %s5807_s16  ;;  %5364 = vmatpush3.msk.msra.mxu0 %vm429_vm0, %v3378_v48  ;;  %v3376_v51 = vsel %vm3361_vm8, %v5526_v37, %v5072_v1 }
 0x3e7   : > { %v3377_v50 = vsel %vm3362_vm7, %v5527_v40, %v5073_v49  ;;  %5366 = vmatmul.mubr.msk.f32.vlgmr.msra.gmra.mrb[8].mxu0 %vm422_vm1, %v3386_v6  ;;  %5368 = vmatprep.subr.mxu0 %v5811_v46 }
 0x3e8   : > { %3545 = vrot.lane.b32.xlu1 %v3377_v50, %s5807_s16  ;;  %5075 = vmatprep.subr.msk.mxu1 %vm429_vm0, %v3377_v50 }
 0x3e9   : > { %5076 = vmatpush1.msk.msra.mxu1 %vm429_vm0, %v3376_v51  ;;  %5370 = vmatprep.mubr.msk.f32.mxu0 %vm5812_vm2, %v5811_v46 }
 0x3ea   : > { %3712 = vrot.lane.b32.xlu0 %v3377_v50, %s5814_s26  ;;  %5077 = vmatmul.mubr.msk.f32.vlgmr.msra.gmra.mrb[6].mxu1 %vm422_vm1, %v3386_v6 }
 0x3eb   : > { %3630 = vmatprep.mubr.f32.mxu1 %v5811_v46 }
 0x3ec   : > { %3543 = vrot.lane.b32.xlu1 %v3376_v51, %s5807_s16  ;;  %s6480_s16 = smov 90  }
 0x3ee   : > { %3710 = vrot.lane.b32.xlu0 %v3376_v51, %s5814_s26 }
 0x3f0   : > { %3714 = vrot.lane.b32.xlu1 %v3378_v48, %s5814_s26 }
 0x3f2   : > { %3881 = vrot.lane.b32.xlu0 %v3378_v48, %s5809_s25 }
 0x3f4   : > { %3879 = vrot.lane.b32.xlu1 %v3377_v50, %s5809_s25 }
 0x3f6   : > { %4046 = vrot.lane.b32.xlu0 %v3377_v50, %s5810_s30 }
 0x3f8   : > { %3877 = vrot.lane.b32.xlu1 %v3376_v51, %s5809_s25 }
 0x3fa   : > { %4044 = vrot.lane.b32.xlu0 %v3376_v51, %s5810_s30 }
 0x3fc   : > { %4048 = vrot.lane.b32.xlu1 %v3378_v48, %s5810_s30 }
 0x3fe   : > { %4215 = vrot.lane.b32.xlu0 %v3378_v48, %s5815_s13 }
 0x400   : > { %4213 = vrot.lane.b32.xlu1 %v3377_v50, %s5815_s13 }
 0x402   : > { %4380 = vrot.lane.b32.xlu0 %v3377_v50, %s6480_s16 }
 0x404   : > { %4211 = vrot.lane.b32.xlu1 %v3376_v51, %s5815_s13  ;;  %s6413_s13 = scalar_lea.hbm %s6466_s11, %s5622_s24 }
 0x406   : > { %4378 = vrot.lane.b32.xlu0 %v3376_v51, %s6480_s16 }
 0x408   : > { %4382 = vrot.lane.b32.xlu1 %v3378_v48, %s6480_s16  ;;  %s407_s16 = scalar_lea.vmem [#allocation5], %s5620_s15 }
 0x409   : > { %s4918_s25 = sshll.u32 %s407_s16, 4  ;;  %s6415_s25 = int_to_ptr.vmem [resolvable:$true] %s4918_s25 }
 0x40a   : > { %4549 = vrot.lane.b32.xlu0 %v3378_v48, %s5817_s29 }
 0x40c   : > { %4547 = vrot.lane.b32.xlu1 %v3377_v50, %s5817_s29 }
 0x40e   : > { %4714 = vrot.lane.b32.xlu0 %v3377_v50, %s5818_s12 }
 0x410   : > { %4545 = vrot.lane.b32.xlu1 %v3376_v51, %s5817_s29  ;;  %s5736_s29 = scalar_lea.vmem %s6415_s25, 192 }
 0x411   : > { %p5737_p6 = scmp.ne.s32.totalorder %s6415_s25, %s5736_s29 }
 0x412   : > { %4712 = vrot.lane.b32.xlu0 %v3376_v51, %s5818_s12 }
 0x413   : > { %p5738_p10 = pnand %p5737_p6, %p6481_p9 }
 0x414   : > { %4716 = vrot.lane.b32.xlu1 %v3378_v48, %s5818_s12  ;;  %s5819_s12 = smov [#allocation5]  }
 0x415   : > { %p5739_p12 = pneg %p5738_p10  ;;  %s5740_s22 = sshll.u32 %s5819_s12, 4  ;;  %s5741_s22 = int_to_ptr.vmem [resolvable:$false] %s5740_s22 }
 0x416   : > { %s5742_s15 = scalar_lea.vmem %s5741_s22, 384  ;;  %p5743_p2 = scmp.lt.s32.totalorder %s6415_s25, %s5741_s22 }
 0x417   : > { %p5744_p3 = scmp.lt.s32.totalorder %s5742_s15, %s5736_s29 }
 0x418   : > { %3382 = vperm.xlu1 %5687, %v3379_v52  }
 0x419   : > { %p5745_p4 = por %p5744_p3, %p5743_p2 }
 0x41b   : > { %p5746_p7 = pnand %p5745_p4, %p5739_p12 }
 0x458   : > { %v3548_v53 = vpop.permute.xlu0 %3547 }
 0x45a   : > { %v3546_v54 = vpop.permute.xlu1 %3545 }
 0x45b   : > { %v3550_v55 = vsel %vm1375_vm4, %v3546_v54, %v3548_v53 }
 0x45c   : > { %v3713_v56 = vpop.permute.xlu0 %3712  ;;  %5081 = vmatprep.subr.msk.mxu1 %vm429_vm0, %v3550_v55 }
 0x45e   : > { %v3544_v57 = vpop.permute.xlu1 %3543 }
 0x45f   : > { %v3549_v60 = vsel %vm1375_vm4, %v3544_v57, %v3546_v54  ;;  %v3553_v61 = vsel %vm1375_vm4, %v3548_v53, %v3544_v57 }
 0x460   : > { %v3711_v62 = vpop.permute.xlu0 %3710  ;;  %5082 = vmatpush1.msk.msra.mxu1 %vm429_vm0, %v3549_v60  ;;  %5369 = vmatpush3.msk.msra.mxu0 %vm429_vm0, %v3553_v61 }
 0x461   : > { %5083 = vmatmul.mubr.msk.f32.vlgmr.msra.gmra.mrb[6].mxu1 %vm422_vm1, %v5080_v58  ;;  %5371 = vmatmul.mubr.msk.f32.vlgmr.msra.gmra.mrb[8].mxu0 %vm422_vm1, %v5080_v58  ;;  %v3716_v3 = vsel %vm2228_vm11, %v3711_v62, %v3713_v56 }
 0x462   : > { %v3715_v63 = vpop.permute.xlu1 %3714  ;;  %5373 = vmatprep.subr.mxu0 %v5811_v46  ;;  %3797 = vmatprep.mubr.f32.mxu1 %v5811_v46 }
 0x463   : > { %v3717_v0 = vsel %vm2228_vm11, %v3713_v56, %v3715_v63  ;;  %v3720_v2 = vsel %vm2228_vm11, %v3715_v63, %v3711_v62  ;;  %5375 = vmatprep.mubr.msk.f32.mxu0 %vm5812_vm2, %v5811_v46 }
 0x464   : > { %v3882_v5 = vpop.permute.xlu0 %3881  ;;  %5087 = vmatprep.subr.msk.mxu1 %vm429_vm0, %v3717_v0  ;;  %5374 = vmatpush3.msk.msra.mxu0 %vm429_vm0, %v3720_v2 }
 0x465   : > { %5088 = vmatpush1.msk.msra.mxu1 %vm429_vm0, %v3716_v3  ;;  %5378 = vmatprep.subr.mxu0 %v5811_v46 }
 0x466   : > { %v3880_v7 = vpop.permute.xlu1 %3879 }
 0x467   : > { %v3884_v9 = vsel %vm1543_vm5, %v3880_v7, %v3882_v5 }
 0x468   : > { %v4047_v10 = vpop.permute.xlu0 %4046  ;;  %5093 = vmatprep.subr.msk.mxu1 %vm429_vm0, %v3884_v9 }
 0x469   : > { %5089 = vmatmul.mubr.msk.f32.vlgmr.msra.gmra.mrb[6].mxu1 %vm422_vm1, %v5086_v8  ;;  %5376 = vmatmul.mubr.msk.f32.vlgmr.msra.gmra.mrb[8].mxu0 %vm422_vm1, %v5086_v8 }
 0x46a   : > { %v3878_v11 = vpop.permute.xlu1 %3877  ;;  %3964 = vmatprep.mubr.f32.mxu1 %v5811_v46  ;;  %5380 = vmatprep.mubr.msk.f32.mxu0 %vm5812_vm2, %v5811_v46 }
 0x46b   : > { %v3883_v12 = vsel %vm1543_vm5, %v3878_v11, %v3880_v7  ;;  %v3887_v13 = vsel %vm1543_vm5, %v3882_v5, %v3878_v11 }
 0x46c   : > { %v4045_v14 = vpop.permute.xlu0 %4044  ;;  %5094 = vmatpush1.msk.msra.mxu1 %vm429_vm0, %v3883_v12  ;;  %5379 = vmatpush3.msk.msra.mxu0 %vm429_vm0, %v3887_v13 }
 0x46d   : > { %5383 = vmatprep.subr.mxu0 %v5811_v46  ;;  %v4050_v21 = vsel %vm1711_vm6, %v4045_v14, %v4047_v10 }
 0x46e   : > { %v4049_v16 = vpop.permute.xlu1 %4048 }
 0x46f   : > { %v4051_v18 = vsel %vm1711_vm6, %v4047_v10, %v4049_v16  ;;  %v4054_v19 = vsel %vm1711_vm6, %v4049_v16, %v4045_v14 }
 0x470   : > { %v4216_v20 = vpop.permute.xlu0 %4215  ;;  %5099 = vmatprep.subr.msk.mxu1 %vm429_vm0, %v4051_v18 }
 0x471   : > { %5095 = vmatmul.mubr.msk.f32.vlgmr.msra.gmra.mrb[6].mxu1 %vm422_vm1, %v5092_v17  ;;  %5381 = vmatmul.mubr.msk.f32.vlgmr.msra.gmra.mrb[8].mxu0 %vm422_vm1, %v5092_v17 }
 0x472   : > { %5100 = vmatpush1.msk.msra.mxu1 %vm429_vm0, %v4050_v21  ;;  %5384 = vmatpush3.msk.msra.mxu0 %vm429_vm0, %v4054_v19  ;;  %v4214_v22 = vpop.permute.xlu1 %4213 }
 0x473   : > { %v4218_v23 = vsel %vm2715_vm12, %v4214_v22, %v4216_v20  ;;  %4131 = vmatprep.mubr.f32.mxu1 %v5811_v46  ;;  %5385 = vmatprep.mubr.msk.f32.mxu0 %vm5812_vm2, %v5811_v46 }
 0x474   : > { %5105 = vmatprep.subr.msk.mxu1 %vm429_vm0, %v4218_v23  ;;  %5388 = vmatprep.subr.mxu0 %v5811_v46  ;;  %v4381_v24 = vpop.permute.xlu0 %4380 }
 0x476   : > { %v4212_v25 = vpop.permute.xlu1 %4211 }
 0x477   : > { %v4217_v27 = vsel %vm2715_vm12, %v4212_v25, %v4214_v22  ;;  %v4221_v28 = vsel %vm2715_vm12, %v4216_v20, %v4212_v25 }
 0x478   : > { %v4379_v30 = vpop.permute.xlu0 %4378 }
 0x479   : > { %5101 = vmatmul.mubr.msk.f32.vlgmr.msra.gmra.mrb[6].mxu1 %vm422_vm1, %v5098_v26  ;;  %5386 = vmatmul.mubr.msk.f32.vlgmr.msra.gmra.mrb[8].mxu0 %vm422_vm1, %v5098_v26  ;;  %v4384_v34 = vsel %vm2878_vm13, %v4379_v30, %v4381_v24 }
 0x47a   : > { %5106 = vmatpush1.msk.msra.mxu1 %vm429_vm0, %v4217_v27  ;;  %5389 = vmatpush3.msk.msra.mxu0 %vm429_vm0, %v4221_v28  ;;  %v4383_v29 = vpop.permute.xlu1 %4382 }
 0x47b   : > { %v4385_v31 = vsel %vm2878_vm13, %v4381_v24, %v4383_v29  ;;  %4298 = vmatprep.mubr.f32.mxu1 %v5811_v46  ;;  %5390 = vmatprep.mubr.msk.f32.mxu0 %vm5812_vm2, %v5811_v46  ;;  %v4388_v35 = vsel %vm2878_vm13, %v4383_v29, %v4379_v30 }
 0x47c   : > { %5111 = vmatprep.subr.msk.mxu1 %vm429_vm0, %v4385_v31  ;;  %5393 = vmatprep.subr.mxu0 %v5811_v46  ;;  %v4550_v36 = vpop.permute.xlu0 %4549 }
 0x47e   : > { %v4548_v32 = vpop.permute.xlu1 %4547 }
 0x47f   : > { %v4552_v37 = vsel %vm3041_vm14, %v4548_v32, %v4550_v36 }
 0x480   : > { %v4715_v41 = vpop.permute.xlu0 %4714 }
 0x481   : > { %5107 = vmatmul.mubr.msk.f32.vlgmr.msra.gmra.mrb[6].mxu1 %vm422_vm1, %v5104_v33  ;;  %5391 = vmatmul.mubr.msk.f32.vlgmr.msra.gmra.mrb[8].mxu0 %vm422_vm1, %v5104_v33 }
 0x482   : > { %5112 = vmatpush1.msk.msra.mxu1 %vm429_vm0, %v4384_v34  ;;  %5394 = vmatpush3.msk.msra.mxu0 %vm429_vm0, %v4388_v35  ;;  %v4546_v38 = vpop.permute.xlu1 %4545 }
 0x483   : > { %5117 = vmatprep.subr.msk.mxu1 %vm429_vm0, %v4552_v37  ;;  %4465 = vmatprep.mubr.f32.mxu1 %v5811_v46  ;;  %v4551_v42 = vsel %vm3041_vm14, %v4546_v38, %v4548_v32  ;;  %v4555_v43 = vsel %vm3041_vm14, %v4550_v36, %v4546_v38 }
 0x484   : > { %5395 = vmatprep.mubr.msk.f32.mxu0 %vm5812_vm2, %v5811_v46  ;;  %5398 = vmatprep.subr.mxu0 %v5811_v46  ;;  %v4713_v45 = vpop.permute.xlu0 %4712 }
 0x485   : > { %v4718_v4 = vsel %vm3204_vm15, %v4713_v45, %v4715_v41 }
 0x486   : > { %v4717_v40 = vpop.permute.xlu1 %4716 }
 0x487   : > { %v4719_v44 = vsel %vm3204_vm15, %v4715_v41, %v4717_v40  ;;  %v4722_v59 = vsel %vm3204_vm15, %v4717_v40, %v4713_v45 }
 0x489   : > { %5113 = vmatmul.mubr.msk.f32.vlgmr.msra.gmra.mrb[6].mxu1 %vm422_vm1, %v5110_v39  ;;  %5396 = vmatmul.mubr.msk.f32.vlgmr.msra.gmra.mrb[8].mxu0 %vm422_vm1, %v5110_v39 }
 0x48a   : > { %5118 = vmatpush1.msk.msra.mxu1 %vm429_vm0, %v4551_v42  ;;  %5399 = vmatpush3.msk.msra.mxu0 %vm429_vm0, %v4555_v43 }
 0x48b   : > { %5123 = vmatprep.subr.msk.mxu1 %vm429_vm0, %v4719_v44  ;;  %4632 = vmatprep.mubr.f32.mxu1 %v5811_v46 }
 0x48c   : > { %5400 = vmatprep.mubr.msk.f32.mxu0 %vm5812_vm2, %v5811_v46  ;;  %5403 = vmatprep.subr.mxu0 %v5811_v46 }
 0x491   : > { %5119 = vmatmul.mubr.msk.f32.vlgmr.msra.gmra.mrb[6].mxu1 %vm422_vm1, %v5116_v15  ;;  %5401 = vmatmul.mubr.msk.f32.vlgmr.msra.gmra.mrb[8].mxu0 %vm422_vm1, %v5116_v15 }
 0x492   : > { %5124 = vmatpush1.msk.msra.mxu1 %vm429_vm0, %v4718_v4  ;;  %5404 = vmatpush3.msk.msra.mxu0 %vm429_vm0, %v4722_v59 }
 0x493   : > { %4799 = vmatprep.mubr.f32.mxu1 %v5811_v46  ;;  %5405 = vmatprep.mubr.msk.f32.mxu0 %vm5812_vm2, %v5811_v46 }
 0x497   : > { %v3383_v1 = vpop.permute.xlu1 %3382 }
 0x499   : > { %5125 = vmatmul.mubr.msk.f32.vlgmr.msra.gmra.mrb[6].mxu1 %vm422_vm1, %v5122_v47  ;;  %5406 = vmatmul.mubr.msk.f32.vlgmr.msra.gmra.mrb[8].mxu0 %vm422_vm1, %v5122_v47 }
 0x56c   : > { %v4801_v6 = vpop.f32.mrb[6].mxu1  ;;  %v4872_v48 = vpop.f32.mrb[8].mxu0 }
 0x56d   : > { %v5529_v49 = vadd.f32 %v4801_v6, %v3383_v1  ;;  %v5531_v50 = vadd.f32 %v4872_v48, %v3383_v1  ;;  %v4803_v51 = vpop.f32.mrb[7].mxu1  ;;  %v5407_v52 = vpop.f32.mrb[9].mxu0 }
 0x56e   : > { %v5530_v53 = vadd.f32 %v4803_v51, %v3383_v1 }
 0x56f   : > { %v4882_v54 = vmin.f32 %v5529_v49, 0.0  ;;  %v4884_v55 = vmin.f32 %v5531_v50, 0.0  ;;  %vm4879_vm0 = vcmp.gt.f32.partialorder %v5529_v49, 0.0  ;;  %vm4881_vm1 = vcmp.gt.f32.partialorder %v5531_v50, 0.0 }
 0x570   : > { %v4883_v46 = vmin.f32 %v5530_v53, 0.0  ;;  %vm4880_vm2 = vcmp.gt.f32.partialorder %v5530_v53, 0.0 }
 0x571   : > { %v4885_v56 = vmul.f32 1.442695, %v4882_v54  ;;  %v4889_v57 = vmul.f32 1.442695, %v4884_v55 }
 0x572   : > { %v4887_v58 = vmul.f32 1.442695, %v4883_v46 }
 0x573   : > { %5702 = vpow2.f32 %v4885_v56 }
 0x574   : > { %5704 = vpow2.f32 %v4889_v57 }
 0x575   : > { %5706 = vpow2.f32 %v4887_v58 }
 0x57d   : > { %v5703_v60 = vpop.eup %5702 }
 0x57e   : > { %v5705_v61 = vpop.eup %5704  ;;  %v5128_v62 = vadd.f32 -1.0, %v5703_v60 }
 0x57f   : > { %v5707_v63 = vpop.eup %5706  ;;  %v5130_v0 = vadd.f32 -1.0, %v5705_v61 }
 0x580   : > { %v4894_v2 = vsel %vm4879_vm0, %v5529_v49, %v5128_v62  ;;  %v5129_v3 = vadd.f32 -1.0, %v5707_v63 }
 0x581   : > { %v4896_v5 = vsel %vm4881_vm1, %v5531_v50, %v5130_v0 }
 0x582   : > { %4902 = vst [vmem:[%s407_s16 + $0x8] sm:$0xf] %v4896_v5  ;;  %v4895_v7 = vsel %vm4880_vm2, %v5530_v53, %v5129_v3 }
 0x583   : > { %v4899_v8 = vcombine.low %v4894_v2, %v4895_v7 }
 0x585   : > { %4901 = vst [vmem:[%s407_s16] sm:$0xff] %v4899_v8 }
 0x586   : > { %5749 = shalt.err (!%p5746_p7)
}
 0x587   : > { %s5750_s14 = scalar_lea.hbm %s6413_s13, 192  ;;  %s5754_s30 = scalar_lea.hbm %s6466_s11, 384 }
 0x588   : > { %p5751_p8 = scmp.ne.s32.totalorder %s6413_s13, %s5750_s14  ;;  %p5755_p1 = scmp.lt.u32.totalorder %s6413_s13, %s6466_s11 }
 0x589   : > { %p5756_p0 = scmp.lt.u32.totalorder %s5754_s30, %s5750_s14  ;;  %p5758_p6 = scmp.lt.u32.totalorder %s5750_s14, %s6413_s13 }
 0x58a   : > { %p5752_p11 = pnand %p5751_p8, %p6481_p9 }
 0x58b   : > { %p5757_p5 = por %p5756_p0, %p5755_p1 }
 0x58c   : > { %p5753_p13 = pneg %p5752_p11 }
 0x58d   : > { %p5759_p10 = por %p5758_p6, %p5757_p5 }
 0x58f   : > { %p5760_p12 = pnand %p5759_p10, %p5753_p13 }
 0x591   : > { %5763 = shalt.err (!%p5760_p12)
}
 0x592   : > { %5627 = dma.vmem_to_hbm [thread:$0]  (%p6481_p9), %s6415_s25, 192, %s6413_s13, %s4904_s21  }
 0x593 PF: > { %p5639_p2 = scmp.ge.s32.totalorder %s5802_s20, 2  ;;  %s4930_s29 = sand.u32 1, %s5790_s17  }
 0x594   : > { %p6482_p3 = scmp.ne.s32.totalorder %s6474_s28, 0  ;;  %s4931_s22 = scalar_lea.sflag [#allocation4], %s4930_s29 }
 0x596   : > { %p5634_p4 = pnand %p5639_p2, %p6482_p3 }
 0x598   : > { %5785 = dma.done.wait (!%p5634_p4), %s4931_s22, 192  }
 0x599   : > { %5787 = vsyncadd (!%p5634_p4), %s4931_s22, 4294967104  ;;  %s6483_s15 = sld [smem:[#allocation8_spill]]  ;;  %p22_p7 = scmp.ge.s32.totalorder %s5905_s23, 4  }
 0x59a   : > { %s6484_s17 = smov %s5794_s18  ;;  %s6485_s18 = smov %s5798_s19 }
 0x59b   : > { %s6487_s20 = smov %s5905_s23  ;;  %24 = sbr.rel (!%p22_p7) target bundleno = 4 (0x4), region = 129 }
 0x59f   : > { %s6486_s19 = smov %s6483_s15 }
 0x5a2   :  { %4936 = vsyncpa [#allocation3], 1 }
 0x5a3   :  { %4938 = vsyncpa [#allocation3 + $0x1], 1 }
 0x5a4   :  { %4939 = vsyncpa [#allocation4], 1 }
 0x5a5   :  { %4941 = vsyncpa [#allocation4 + $0x1], 1 }

</bundles_post_ra>
